<compile_context>
chip_gen: v6e
topology: v6e:2x2x1
jax: 0.10.0
libtpu: 0.0.40
codegen_flags: <defaults>
</compile_context>

<pallas_src>
import numpy as np
import jax
import jax.numpy as jnp
from jax import lax
from jax.experimental import pallas as pl
from jax.experimental.pallas import tpu as pltpu


def _i32(pattern):
    """Reinterpret a 32-bit pattern as a signed int32 Python int."""
    pattern &= 0xFFFFFFFF
    return pattern - (1 << 32) if pattern >= (1 << 31) else pattern


_MIX1 = np.int32(_i32(0x7FEB352D))
_MIX2 = np.int32(_i32(0x846CA68B))
_SH16 = np.int32(16)
_SH15 = np.int32(15)
_SH8 = np.int32(8)


def _round_up(v, m):
    return ((v + m - 1) // m) * m


def _make_kernel(M, N, tm, tn, grid_m):
    has_row_tail = (M % tm) != 0

    def kernel(seed_ref, o_ref):
        j = pl.program_id(0)  # column block (independent -> "parallel")
        i = pl.program_id(1)  # row block    (reduction, innermost)

        # Zero the resident (8, tn) accumulator at the start of each column
        # block's row reduction.
        @pl.when(i == 0)
        def _init():
            o_ref[...] = jnp.zeros_like(o_ref)

        rows = lax.broadcasted_iota(jnp.int32, (tm, tn), 0) + i * tm
        cols = lax.broadcasted_iota(jnp.int32, (tm, tn), 1) + j * tn

        # Counter-based RNG: lowbias32 avalanche of (linear index + seed).
        # Logical shifts + wrapping int32 multiplies, all plain int32 vector
        # ops (portable: TPU + interpret).
        h = rows * N + cols + seed_ref[0]
        h = h ^ lax.shift_right_logical(h, _SH16)
        h = h * _MIX1
        h = h ^ lax.shift_right_logical(h, _SH15)
        h = h * _MIX2
        h = h ^ lax.shift_right_logical(h, _SH16)

        # Top 24 bits, left UNSCALED (the 2^-24 factor is folded into the
        # wrapper's 1/(M*N) epilogue multiply).
        u = lax.shift_right_logical(h, _SH8).astype(jnp.float32)

        def accumulate(vals):
            # Fold tm rows into the 8-sublane accumulator with tile-aligned
            # full-sublane adds (no XLU reduce, no masked 1-row RMW).
            acc = vals[0:8, :]
            for r in range(1, tm // 8):
                acc = acc + vals[r * 8:(r + 1) * 8, :]
            o_ref[...] += acc

        if has_row_tail:
            # Interior tiles: unmasked fast path.
            @pl.when(i < grid_m - 1)
            def _interior():
                accumulate(u)

            # Last row block: mask padded rows only.
            @pl.when(i == grid_m - 1)
            def _last():
                accumulate(jnp.where(rows < M, u, 0.0))
        else:
            accumulate(u)

    return kernel


def rand_like_mean(x, seed=0, tm_max=512, tn_max=1024):
    """Pallas implementation of RandLikeModule.forward: mean(rand_like(x))."""
    M, N = x.shape

    # --- Row tiling: balanced blocks, multiple of 8 sublanes. ---
    grid_m = pl.cdiv(M, tm_max)
    tm = _round_up(pl.cdiv(M, grid_m), 8)
    grid_m = pl.cdiv(M, tm)

    # --- Column tiling: lane-dense multiples of 128.  Keep >= 2 column
    # blocks whenever the padded width allows so v7x's two TensorCores both
    # get work on the leading "parallel" grid axis. ---
    n_pad = _round_up(N, 128)
    if n_pad >= 256:
        grid_n = max(2, pl.cdiv(n_pad, tn_max))
        tn = _round_up(pl.cdiv(n_pad, grid_n), 128)
        n_pad = grid_n * tn
    else:
        tn = n_pad
        grid_n = 1

    # Host-side seed avalanche so different base seeds give decorrelated
    # streams even though the kernel folds the seed in additively.
    mixed_seed = _i32((int(seed) * 0x9E3779B9) ^ 0x3C6EF372)
    seed_arr = jnp.array([mixed_seed], dtype=jnp.int32)

    partials = pl.pallas_call(
        _make_kernel(M, N, tm, tn, grid_m),
        out_shape=jax.ShapeDtypeStruct((8, n_pad), jnp.float32),
        grid=(grid_n, grid_m),
        in_specs=[pl.BlockSpec(memory_space=pltpu.MemorySpace.SMEM)],
        out_specs=pl.BlockSpec((8, tn), lambda j, i: (0, j)),
        compiler_params=pltpu.CompilerParams(
            # Column blocks are independent -> shardable across v7x's 2 TCs;
            # the row axis accumulates into a resident output block.
            dimension_semantics=("parallel", "arbitrary"),
            # Headroom for the (tm, tn) int32/f32 temporaries (a few MiB per
            # live array): above v5e's 16 MiB scoped default, well under
            # v7x's 64 MiB physical VMEM.
            vmem_limit_bytes=32 * 1024 * 1024,
        ),
        cost_estimate=pl.CostEstimate(
            flops=15 * grid_m * tm * n_pad,   # hash + accumulate, per element
            transcendentals=0,
            bytes_accessed=8 * n_pad * 4 + 4,  # tiny output slab + seed
        ),
    )(seed_arr)

    # Tiny epilogue: drop padded columns, reduce, and apply the deferred
    # 2^-24 scale together with the 1/(M*N) mean normalization.
    total = jnp.sum(partials[:, :N])
    scale = np.float32(1.0 / (float(1 << 24) * M * N))
    return total * scale


if __name__ == "__main__":
    key = jax.random.PRNGKey(0)

    # Module input: 2-D float64 tensor.  Its values never affect the output
    # (rand_like only uses the shape); f32 stands in for f64 on TPU.
    x = jax.random.normal(key, (200, 300), dtype=jnp.float32)

    mean = jax.block_until_ready(rand_like_mean(x, seed=0))
    assert mean.shape == ()
    m = float(mean)
    assert 0.45 < m < 0.55, f"mean of rand_like(x) should be ~0.5, got {m}"

    # Determinism: same seed -> identical draw.
    mean_again = jax.block_until_ready(rand_like_mean(x, seed=0))
    assert float(mean_again) == m

    # Different seed: still a valid uniform mean.
    mean_alt = jax.block_until_ready(rand_like_mean(x, seed=123))
    assert 0.45 < float(mean_alt) < 0.55

    # A shape exercising multiple grid steps + row-tail masking.
    x2 = jax.random.normal(jax.random.PRNGKey(1), (520, 1300), dtype=jnp.float32)
    mean_big = jax.block_until_ready(rand_like_mean(x2, seed=7))
    assert 0.45 < float(mean_big) < 0.55, f"got {float(mean_big)}"

    print("KERNEL_OK")
</pallas_src>

<mosaic_0001>
module attributes {stable_mosaic.version = 11 : i64} {
  func.func @kernel(%arg0: i32, %arg1: i32, %arg2: memref<1xi32, #tpu.memory_space<smem>>, %arg3: memref<8x256xf32, #tpu.memory_space<vmem>>) attributes {dimension_semantics = [#tpu.dimension_semantics<parallel>, #tpu.dimension_semantics<arbitrary>], iteration_bounds = array<i64: 2, 1>, scalar_prefetch = 0 : i64, scratch_operands = 0 : i64, tpu.core_type = #tpu.core_type<tc>, window_params = [{transform_indices = @transform_0, window_bounds = array<i64: 1>}, {transform_indices = @transform_1, window_bounds = array<i64: 8, 256>}]} {
    %c0_i32 = arith.constant 0 : i32
    %0 = arith.cmpi eq, %arg1, %c0_i32 : i32
    %1 = arith.extui %0 : i1 to i32
    %c0_i32_0 = arith.constant 0 : i32
    %2 = arith.cmpi ne, %1, %c0_i32_0 : i32
    scf.if %2 {
      %cst = arith.constant 0.000000e+00 : f32
      %85 = vector.broadcast %cst : f32 to vector<8x256xf32>
      %c0_6 = arith.constant 0 : index
      %c0_7 = arith.constant 0 : index
      %86 = vector.load %arg3[%c0_6, %c0_7] : memref<8x256xf32, #tpu.memory_space<vmem>>, vector<8x256xf32>
      tpu.vector_store %arg3[%c0_6, %c0_7], %85 {strides = array<i32>} : memref<8x256xf32, #tpu.memory_space<vmem>>, vector<8x256xf32>,
    } else {
    }
    %3 = tpu.iota {dimensions = array<i32: 0>} : vector<200x256xi32>
    %c200_i32 = arith.constant 200 : i32
    %4 = arith.muli %arg1, %c200_i32 : i32
    %5 = vector.broadcast %4 : i32 to vector<200x256xi32>
    %6 = arith.addi %3, %5 : vector<200x256xi32>
    %7 = tpu.iota {dimensions = array<i32: 1>} : vector<200x256xi32>
    %c256_i32 = arith.constant 256 : i32
    %8 = arith.muli %arg0, %c256_i32 : i32
    %9 = vector.broadcast %8 : i32 to vector<200x256xi32>
    %10 = arith.addi %7, %9 : vector<200x256xi32>
    %c300_i32 = arith.constant 300 : i32
    %11 = vector.broadcast %c300_i32 : i32 to vector<200x256xi32>
    %12 = arith.muli %6, %11 : vector<200x256xi32>
    %13 = arith.addi %12, %10 : vector<200x256xi32>
    %c0 = arith.constant 0 : index
    %14 = memref.load %arg2[%c0] : memref<1xi32, #tpu.memory_space<smem>>
    %15 = vector.broadcast %14 : i32 to vector<200x256xi32>
    %16 = arith.addi %13, %15 : vector<200x256xi32>
    %c16_i32 = arith.constant 16 : i32
    %17 = vector.broadcast %c16_i32 : i32 to vector<200x256xi32>
    %18 = arith.shrui %16, %17 : vector<200x256xi32>
    %19 = arith.xori %16, %18 : vector<200x256xi32>
    %c2146121005_i32 = arith.constant 2146121005 : i32
    %20 = vector.broadcast %c2146121005_i32 : i32 to vector<200x256xi32>
    %21 = arith.muli %19, %20 : vector<200x256xi32>
    %c15_i32 = arith.constant 15 : i32
    %22 = vector.broadcast %c15_i32 : i32 to vector<200x256xi32>
    %23 = arith.shrui %21, %22 : vector<200x256xi32>
    %24 = arith.xori %21, %23 : vector<200x256xi32>
    %c-2073254261_i32 = arith.constant -2073254261 : i32
    %25 = vector.broadcast %c-2073254261_i32 : i32 to vector<200x256xi32>
    %26 = arith.muli %24, %25 : vector<200x256xi32>
    %c16_i32_1 = arith.constant 16 : i32
    %27 = vector.broadcast %c16_i32_1 : i32 to vector<200x256xi32>
    %28 = arith.shrui %26, %27 : vector<200x256xi32>
    %29 = arith.xori %26, %28 : vector<200x256xi32>
    %c8_i32 = arith.constant 8 : i32
    %30 = vector.broadcast %c8_i32 : i32 to vector<200x256xi32>
    %31 = arith.shrui %29, %30 : vector<200x256xi32>
    %32 = arith.sitofp %31 : vector<200x256xi32> to vector<200x256xf32>
    %33 = vector.extract_strided_slice %32 {offsets = [0, 0], sizes = [8, 256], strides = [1, 1]} : vector<200x256xf32> to vector<8x256xf32>
    %34 = vector.extract_strided_slice %32 {offsets = [8, 0], sizes = [8, 256], strides = [1, 1]} : vector<200x256xf32> to vector<8x256xf32>
    %35 = arith.addf %33, %34 : vector<8x256xf32>
    %36 = vector.extract_strided_slice %32 {offsets = [16, 0], sizes = [8, 256], strides = [1, 1]} : vector<200x256xf32> to vector<8x256xf32>
    %37 = arith.addf %35, %36 : vector<8x256xf32>
    %38 = vector.extract_strided_slice %32 {offsets = [24, 0], sizes = [8, 256], strides = [1, 1]} : vector<200x256xf32> to vector<8x256xf32>
    %39 = arith.addf %37, %38 : vector<8x256xf32>
    %40 = vector.extract_strided_slice %32 {offsets = [32, 0], sizes = [8, 256], strides = [1, 1]} : vector<200x256xf32> to vector<8x256xf32>
    %41 = arith.addf %39, %40 : vector<8x256xf32>
    %42 = vector.extract_strided_slice %32 {offsets = [40, 0], sizes = [8, 256], strides = [1, 1]} : vector<200x256xf32> to vector<8x256xf32>
    %43 = arith.addf %41, %42 : vector<8x256xf32>
    %44 = vector.extract_strided_slice %32 {offsets = [48, 0], sizes = [8, 256], strides = [1, 1]} : vector<200x256xf32> to vector<8x256xf32>
    %45 = arith.addf %43, %44 : vector<8x256xf32>
    %46 = vector.extract_strided_slice %32 {offsets = [56, 0], sizes = [8, 256], strides = [1, 1]} : vector<200x256xf32> to vector<8x256xf32>
    %47 = arith.addf %45, %46 : vector<8x256xf32>
    %48 = vector.extract_strided_slice %32 {offsets = [64, 0], sizes = [8, 256], strides = [1, 1]} : vector<200x256xf32> to vector<8x256xf32>
    %49 = arith.addf %47, %48 : vector<8x256xf32>
    %50 = vector.extract_strided_slice %32 {offsets = [72, 0], sizes = [8, 256], strides = [1, 1]} : vector<200x256xf32> to vector<8x256xf32>
    %51 = arith.addf %49, %50 : vector<8x256xf32>
    %52 = vector.extract_strided_slice %32 {offsets = [80, 0], sizes = [8, 256], strides = [1, 1]} : vector<200x256xf32> to vector<8x256xf32>
    %53 = arith.addf %51, %52 : vector<8x256xf32>
    %54 = vector.extract_strided_slice %32 {offsets = [88, 0], sizes = [8, 256], strides = [1, 1]} : vector<200x256xf32> to vector<8x256xf32>
    %55 = arith.addf %53, %54 : vector<8x256xf32>
    %56 = vector.extract_strided_slice %32 {offsets = [96, 0], sizes = [8, 256], strides = [1, 1]} : vector<200x256xf32> to vector<8x256xf32>
    %57 = arith.addf %55, %56 : vector<8x256xf32>
    %58 = vector.extract_strided_slice %32 {offsets = [104, 0], sizes = [8, 256], strides = [1, 1]} : vector<200x256xf32> to vector<8x256xf32>
    %59 = arith.addf %57, %58 : vector<8x256xf32>
    %60 = vector.extract_strided_slice %32 {offsets = [112, 0], sizes = [8, 256], strides = [1, 1]} : vector<200x256xf32> to vector<8x256xf32>
    %61 = arith.addf %59, %60 : vector<8x256xf32>
    %62 = vector.extract_strided_slice %32 {offsets = [120, 0], sizes = [8, 256], strides = [1, 1]} : vector<200x256xf32> to vector<8x256xf32>
    %63 = arith.addf %61, %62 : vector<8x256xf32>
    %64 = vector.extract_strided_slice %32 {offsets = [128, 0], sizes = [8, 256], strides = [1, 1]} : vector<200x256xf32> to vector<8x256xf32>
    %65 = arith.addf %63, %64 : vector<8x256xf32>
    %66 = vector.extract_strided_slice %32 {offsets = [136, 0], sizes = [8, 256], strides = [1, 1]} : vector<200x256xf32> to vector<8x256xf32>
    %67 = arith.addf %65, %66 : vector<8x256xf32>
    %68 = vector.extract_strided_slice %32 {offsets = [144, 0], sizes = [8, 256], strides = [1, 1]} : vector<200x256xf32> to vector<8x256xf32>
    %69 = arith.addf %67, %68 : vector<8x256xf32>
    %70 = vector.extract_strided_slice %32 {offsets = [152, 0], sizes = [8, 256], strides = [1, 1]} : vector<200x256xf32> to vector<8x256xf32>
    %71 = arith.addf %69, %70 : vector<8x256xf32>
    %72 = vector.extract_strided_slice %32 {offsets = [160, 0], sizes = [8, 256], strides = [1, 1]} : vector<200x256xf32> to vector<8x256xf32>
    %73 = arith.addf %71, %72 : vector<8x256xf32>
    %74 = vector.extract_strided_slice %32 {offsets = [168, 0], sizes = [8, 256], strides = [1, 1]} : vector<200x256xf32> to vector<8x256xf32>
    %75 = arith.addf %73, %74 : vector<8x256xf32>
    %76 = vector.extract_strided_slice %32 {offsets = [176, 0], sizes = [8, 256], strides = [1, 1]} : vector<200x256xf32> to vector<8x256xf32>
    %77 = arith.addf %75, %76 : vector<8x256xf32>
    %78 = vector.extract_strided_slice %32 {offsets = [184, 0], sizes = [8, 256], strides = [1, 1]} : vector<200x256xf32> to vector<8x256xf32>
    %79 = arith.addf %77, %78 : vector<8x256xf32>
    %80 = vector.extract_strided_slice %32 {offsets = [192, 0], sizes = [8, 256], strides = [1, 1]} : vector<200x256xf32> to vector<8x256xf32>
    %81 = arith.addf %79, %80 : vector<8x256xf32>
    %c0_2 = arith.constant 0 : index
    %c0_3 = arith.constant 0 : index
    %82 = vector.load %arg3[%c0_2, %c0_3] : memref<8x256xf32, #tpu.memory_space<vmem>>, vector<8x256xf32>
    %83 = arith.addf %82, %81 : vector<8x256xf32>
    %c0_4 = arith.constant 0 : index
    %c0_5 = arith.constant 0 : index
    %84 = vector.load %arg3[%c0_4, %c0_5] : memref<8x256xf32, #tpu.memory_space<vmem>>, vector<8x256xf32>
    tpu.vector_store %arg3[%c0_4, %c0_5], %83 {strides = array<i32>} : memref<8x256xf32, #tpu.memory_space<vmem>>, vector<8x256xf32>,
    return
  }
  func.func @transform_0(%arg0: i32, %arg1: i32) -> i32 {
    %c0_i32 = arith.constant 0 : i32
    %c0_i32_0 = arith.constant 0 : i32
    return %c0_i32 : i32
  }
  func.func @transform_1(%arg0: i32, %arg1: i32) -> (i32, i32) {
    %c0_i32 = arith.constant 0 : i32
    %c0_i32_0 = arith.constant 0 : i32
    return %c0_i32, %arg0 : i32, i32
  }
}

</mosaic_0001>

<bundles_post_ra>
// kernel: tpu_custom_call.1
= control target key start
LH: loop header
LB: loop body
LE: loop exit
PB: predicated region body
PF: predicated region fallthrough
CT: control target
= control target key end

     0   :  { %s2485_s0 = inlined_call_operand.<no memory space> [shape: s32[1], index: 0, kind: input, shape index: {}]   ;;  %s2486_s1 = inlined_call_operand.hbm [shape: f32[8,512], index: 1, kind: output, shape index: {}]  }
   0x1   :  { %6 = sst [smem:[#allocation2]] %s2485_s0 }
   0x2   :  { %7 = vsyncpa [#allocation4], 0 }
   0x3   :  { %9 = vsyncpa [#allocation4 + $0x1], 0  ;;  %s1086_s8 = smov 0   ;;  %s1088_s9 = smov 0  }
   0x4   :  { %s1090_s10 = smov 0   ;;  %s1092_s11 = smov 0  }
   0x5   :  { %s1094_s12 = smov 0   ;;  %s1096_s13 = smov 0  }
   0x6 LB: > { %s926_s0 = sadd.s32 4294967295, %s1070_s13   ;;  %s927_s14 = sadd.s32 4294967294, %s1070_s13   ;;  %s1070_s13 = sphi %s1096_s13, %s15_s13   ;;  %s1066_s12 = sphi %s1094_s12, %s3102_s12   ;;  %s1062_s11 = sphi %s1092_s11, %s3101_s11   ;;  %s1058_s10 = sphi %s1090_s10, %s3100_s10   ;;  %s1054_s9 = sphi %s1088_s9, %s3099_s9   ;;  %s1050_s8 = sphi %s1086_s8, %s3098_s8  }
   0x7   : > { %s27_s15 = sadd.s32 1, %s1066_s12  ;;  %s55_s16 = sadd.s32 1, %s1058_s10 }
   0x8   : > { %p29_p0 = scmp.ge.s32.totalorder %s27_s15, 2  ;;  %p65_p1 = scmp.ne.s32.totalorder %s1058_s10, %s1054_s9 }
   0x9   : > { %p66_p2 = scmp.eq.s32.totalorder %s926_s0, 1  ;;  %p71_p3 = scmp.ne.s32.totalorder %s1054_s9, %s1050_s8 }
   0xa   : > { %s3104_s15 = smov (%p29_p0, %s27_s15), 0  ;;  %p72_p5 = scmp.eq.s32.totalorder %s927_s14, 1 }
   0xb   : > { %p1126_p4 = por %p66_p2, %p65_p1  ;;  %s52_s18 = ssub.s32 %s1066_s12, %s3104_s15 }
   0xc   : > { %p929_p6 = scmp.ge.s32.totalorder %s1070_s13, 1  ;;  %p53_p7 = scmp.eq.s32.totalorder %s52_s18, 0 }
   0xd   : > { %p1133_p8 = por %p72_p5, %p71_p3  ;;  %p93_p9 = scmp.lt.s32.totalorder %s1070_s13, 3 }
   0xe   : > { %s1139_s20 = scalar_select %p53_p7, %s1058_s10, %s55_s16  }
   0xf   : > { %p94_p10 = pnand %p929_p6, %p93_p9 }
  0x11   : > { %97 = sbr.rel (%p94_p10) target bundleno = 270 (0x10e), region = 24 }
  0x16   : > { %v115_v0 = vlaneseq  ;;  %s931_s21 = sshll.u32 %s1062_s11, 8  ;;  %s1144_s22 = sld [smem:[#allocation2]] }
  0x17   : > { %v172_v4 = vstv %s931_s21  ;;  %s105_s23 = sand.u32 1, %s1054_s9   ;;  %s2443_s29 = scalar_lea.hbm %s2486_s1, %s931_s21 }
  0x18   : > { %v116_v1 = vshrl.u32 %v115_v0, 7  ;;  %v169_v2 = vand.u32 127, %v115_v0  ;;  %s930_s24 = sshll.u32 %s105_s23, 4  ;;  %s857_s30 = scalar_lea.sflag [#allocation4], %s105_s23 }
  0x19   : > { %s107_s25 = scalar_lea.vmem [#allocation3], %s930_s24  ;;  %s1072_s3 = smov [#allocation3]  }
  0x1a   : > { %v117_v3 = vadd.s32 8, %v116_v1  ;;  %v118_v5 = vadd.s32 16, %v116_v1  ;;  %v119_v6 = vadd.s32 24, %v116_v1  ;;  %v120_v7 = vadd.s32 32, %v116_v1  ;;  %s871_s26 = sshll.u32 %s107_s25, 4  ;;  %s998_s4 = sshll.u32 %s1072_s3, 4  ;;  %s872_s26 = int_to_ptr.vmem [resolvable:$true] %s871_s26  ;;  %s999_s4 = int_to_ptr.vmem [resolvable:$false] %s998_s4 }
  0x1b   : > { %v121_v8 = vadd.s32 40, %v116_v1  ;;  %v122_v9 = vadd.s32 48, %v116_v1  ;;  %v123_v10 = vadd.s32 56, %v116_v1  ;;  %v1146_v11 = vadd.s32 64, %v116_v1  ;;  %s994_s2 = scalar_lea.vmem %s872_s26, 256  ;;  %s1000_s5 = scalar_lea.vmem %s999_s4, 512 }
  0x1c   : > { %v1148_v12 = vadd.s32 72, %v116_v1  ;;  %v1150_v13 = vadd.s32 80, %v116_v1  ;;  %v1152_v14 = vadd.s32 88, %v116_v1  ;;  %v1154_v15 = vadd.s32 96, %v116_v1  ;;  %p995_p11 = scmp.ne.s32.totalorder %s872_s26, %s994_s2  ;;  %p1001_p0 = scmp.lt.s32.totalorder %s872_s26, %s999_s4 }
  0x1d   : > { %v170_v16 = vadd.s32 128, %v169_v2  ;;  %v1156_v17 = vadd.s32 104, %v116_v1  ;;  %v1158_v18 = vadd.s32 112, %v116_v1  ;;  %v1160_v19 = vadd.s32 120, %v116_v1  ;;  %p1002_p1 = scmp.lt.s32.totalorder %s1000_s5, %s994_s2 }
  0x1e   : > { %v1162_v20 = vadd.s32 128, %v116_v1  ;;  %v1164_v21 = vadd.s32 136, %v116_v1  ;;  %v1166_v22 = vadd.s32 144, %v116_v1  ;;  %v1168_v23 = vadd.s32 %v172_v4, %v169_v2  ;;  %p996_p12 = pnand %p995_p11, %p1126_p4 }
  0x1f   : > { %v175_v24 = vmul.u32 300, %v116_v1  ;;  %v1170_v25 = vadd.s32 152, %v116_v1  ;;  %v1172_v26 = vadd.s32 160, %v116_v1  ;;  %v176_v27 = vmul.u32 300, %v117_v3  ;;  %p1003_p2 = por %p1002_p1, %p1001_p0 }
  0x20   : > { %v177_v28 = vmul.u32 300, %v118_v5  ;;  %v1174_v29 = vadd.s32 168, %v116_v1  ;;  %v1176_v30 = vadd.s32 176, %v116_v1  ;;  %v1178_v31 = vadd.s32 %v172_v4, %v170_v16  ;;  %p997_p13 = pneg %p996_p12 }
  0x21   : > { %v178_v32 = vmul.u32 300, %v119_v6  ;;  %v1180_v33 = vadd.s32 184, %v116_v1  ;;  %v1182_v34 = vadd.s32 192, %v116_v1  ;;  %v179_v35 = vmul.u32 300, %v120_v7 }
  0x22   : > { %v180_v36 = vmul.u32 300, %v121_v8  ;;  %v181_v37 = vmul.u32 300, %v122_v9  ;;  %v1185_v39 = vadd.s32 %v175_v24, %v1168_v23  ;;  %v1188_v40 = vstv %s1144_s22  ;;  %p1004_p3 = pnand %p1003_p2, %p997_p13 }
  0x23   : > { %v182_v38 = vmul.u32 300, %v123_v10  ;;  %v183_v41 = vmul.u32 300, %v1146_v11  ;;  %v1193_v43 = vadd.s32 %v176_v27, %v1168_v23  ;;  %v1196_v44 = vadd.s32 %v177_v28, %v1168_v23 }
  0x24   : > { %v184_v42 = vmul.u32 300, %v1148_v12  ;;  %v185_v45 = vmul.u32 300, %v1150_v13  ;;  %v201_v47 = vadd.s32 %v175_v24, %v1178_v31  ;;  %v203_v48 = vadd.s32 %v176_v27, %v1178_v31 }
  0x25   : > { %v186_v46 = vmul.u32 300, %v1152_v14  ;;  %v187_v49 = vmul.u32 300, %v1154_v15  ;;  %v205_v51 = vadd.s32 %v177_v28, %v1178_v31  ;;  %v206_v52 = vadd.s32 %v178_v32, %v1168_v23 }
  0x26   : > { %v188_v50 = vmul.u32 300, %v1156_v17  ;;  %v189_v53 = vmul.u32 300, %v1158_v18  ;;  %v207_v55 = vadd.s32 %v178_v32, %v1178_v31  ;;  %v208_v56 = vadd.s32 %v179_v35, %v1168_v23 }
  0x27   : > { %v190_v54 = vmul.u32 300, %v1160_v19  ;;  %v191_v57 = vmul.u32 300, %v1162_v20  ;;  %v209_v59 = vadd.s32 %v179_v35, %v1178_v31  ;;  %v210_v60 = vadd.s32 %v180_v36, %v1168_v23 }
  0x28   : > { %v192_v58 = vmul.u32 300, %v1164_v21  ;;  %v193_v61 = vmul.u32 300, %v1166_v22  ;;  %v211_v63 = vadd.s32 %v180_v36, %v1178_v31  ;;  %v212_v0 = vadd.s32 %v181_v37, %v1168_v23 }
  0x29   : > { %v194_v62 = vmul.u32 300, %v1170_v25  ;;  %v195_v1 = vmul.u32 300, %v1172_v26  ;;  %v213_v3 = vadd.s32 %v181_v37, %v1178_v31  ;;  %v214_v4 = vadd.s32 %v182_v38, %v1168_v23 }
  0x2a   : > { %v196_v2 = vmul.u32 300, %v1174_v29  ;;  %v197_v5 = vmul.u32 300, %v1176_v30  ;;  %v215_v7 = vadd.s32 %v182_v38, %v1178_v31  ;;  %v216_v8 = vadd.s32 %v183_v41, %v1168_v23 }
  0x2b   : > { %v198_v6 = vmul.u32 300, %v1180_v33  ;;  %v199_v9 = vmul.u32 300, %v1182_v34  ;;  %v217_v10 = vadd.s32 %v183_v41, %v1178_v31  ;;  %v218_v11 = vadd.s32 %v184_v42, %v1168_v23 }
  0x2c   : > { %v219_v12 = vadd.s32 %v184_v42, %v1178_v31  ;;  %v220_v13 = vadd.s32 %v185_v45, %v1168_v23  ;;  %v221_v14 = vadd.s32 %v185_v45, %v1178_v31  ;;  %v222_v15 = vadd.s32 %v186_v46, %v1168_v23 }
  0x2d   : > { %v223_v16 = vadd.s32 %v186_v46, %v1178_v31  ;;  %v224_v17 = vadd.s32 %v187_v49, %v1168_v23  ;;  %v225_v18 = vadd.s32 %v187_v49, %v1178_v31  ;;  %v226_v19 = vadd.s32 %v188_v50, %v1168_v23 }
  0x2e   : > { %v227_v20 = vadd.s32 %v188_v50, %v1178_v31  ;;  %v228_v21 = vadd.s32 %v189_v53, %v1168_v23  ;;  %v229_v22 = vadd.s32 %v189_v53, %v1178_v31  ;;  %v230_v24 = vadd.s32 %v190_v54, %v1168_v23 }
  0x2f   : > { %v231_v25 = vadd.s32 %v190_v54, %v1178_v31  ;;  %v232_v26 = vadd.s32 %v191_v57, %v1168_v23  ;;  %v233_v27 = vadd.s32 %v191_v57, %v1178_v31  ;;  %v234_v28 = vadd.s32 %v192_v58, %v1168_v23 }
  0x30   : > { %v235_v29 = vadd.s32 %v192_v58, %v1178_v31  ;;  %v236_v30 = vadd.s32 %v193_v61, %v1168_v23  ;;  %v237_v32 = vadd.s32 %v193_v61, %v1178_v31  ;;  %v238_v33 = vadd.s32 %v194_v62, %v1168_v23 }
  0x31   : > { %v239_v34 = vadd.s32 %v194_v62, %v1178_v31  ;;  %v240_v35 = vadd.s32 %v195_v1, %v1168_v23  ;;  %v241_v36 = vadd.s32 %v195_v1, %v1178_v31  ;;  %v242_v37 = vadd.s32 %v196_v2, %v1168_v23 }
  0x32   : > { %v243_v38 = vadd.s32 %v196_v2, %v1178_v31  ;;  %v244_v41 = vadd.s32 %v197_v5, %v1168_v23  ;;  %v245_v42 = vadd.s32 %v197_v5, %v1178_v31  ;;  %v246_v45 = vadd.s32 %v198_v6, %v1168_v23 }
  0x33   : > { %v247_v46 = vadd.s32 %v198_v6, %v1178_v31  ;;  %v248_v49 = vadd.s32 %v199_v9, %v1168_v23  ;;  %v249_v50 = vadd.s32 %v199_v9, %v1178_v31  ;;  %v1262_v53 = vadd.s32 %v1188_v40, %v1185_v39 }
  0x34   : > { %v1265_v54 = vadd.s32 %v1188_v40, %v201_v47  ;;  %v1269_v57 = vadd.s32 %v1188_v40, %v1193_v43  ;;  %v1272_v58 = vadd.s32 %v1188_v40, %v203_v48  ;;  %v1276_v61 = vadd.s32 %v1188_v40, %v1196_v44 }
  0x35   : > { %v1279_v23 = vadd.s32 %v1188_v40, %v205_v51  ;;  %v1282_v31 = vadd.s32 %v1188_v40, %v206_v52  ;;  %v1285_v39 = vadd.s32 %v1188_v40, %v207_v55  ;;  %v1288_v47 = vadd.s32 %v1188_v40, %v208_v56 }
  0x36   : > { %2613 = vst [vmem:[#allocation6_spill] sm:$0xff] %v1276_v61  ;;  %v1291_v43 = vadd.s32 %v1188_v40, %v209_v59  ;;  %v1294_v48 = vadd.s32 %v1188_v40, %v210_v60  ;;  %v1297_v44 = vadd.s32 %v1188_v40, %v211_v63  ;;  %v1300_v51 = vadd.s32 %v1188_v40, %v212_v0 }
  0x37   : > { %2614 = vst [vmem:[#allocation7_spill] sm:$0xff] %v1279_v23  ;;  %2615 = vst [vmem:[#allocation8_spill] sm:$0xff] %v1282_v31  ;;  %v1303_v52 = vadd.s32 %v1188_v40, %v213_v3  ;;  %v1306_v55 = vadd.s32 %v1188_v40, %v214_v4  ;;  %v1309_v56 = vadd.s32 %v1188_v40, %v215_v7 }
  0x38   : > { %2616 = vst [vmem:[#allocation9_spill] sm:$0xff] %v1285_v39  ;;  %2617 = vst [vmem:[#allocation10_spill] sm:$0xff] %v1288_v47  ;;  %v1312_v59 = vadd.s32 %v1188_v40, %v216_v8  ;;  %v1315_v60 = vadd.s32 %v1188_v40, %v217_v10  ;;  %v1318_v62 = vadd.s32 %v1188_v40, %v218_v11 }
  0x39   : > { %2618 = vst [vmem:[#allocation11_spill] sm:$0xff] %v1291_v43  ;;  %2619 = vst [vmem:[#allocation12_spill] sm:$0xff] %v1294_v48  ;;  %v1321_v63 = vadd.s32 %v1188_v40, %v219_v12  ;;  %v1324_v0 = vadd.s32 %v1188_v40, %v220_v13  ;;  %v1327_v1 = vadd.s32 %v1188_v40, %v221_v14 }
  0x3a   : > { %2620 = vst [vmem:[#allocation13_spill] sm:$0xff] %v1297_v44  ;;  %2621 = vst [vmem:[#allocation14_spill] sm:$0xff] %v1300_v51  ;;  %v1330_v2 = vadd.s32 %v1188_v40, %v222_v15  ;;  %v1333_v3 = vadd.s32 %v1188_v40, %v223_v16  ;;  %v1336_v4 = vadd.s32 %v1188_v40, %v224_v17 }
  0x3b   : > { %2622 = vst [vmem:[#allocation15_spill] sm:$0xff] %v1303_v52  ;;  %2623 = vst [vmem:[#allocation16_spill] sm:$0xff] %v1306_v55  ;;  %v1339_v5 = vadd.s32 %v1188_v40, %v225_v18  ;;  %v1342_v6 = vadd.s32 %v1188_v40, %v226_v19  ;;  %v1345_v7 = vadd.s32 %v1188_v40, %v227_v20 }
  0x3c   : > { %2624 = vst [vmem:[#allocation17_spill] sm:$0xff] %v1309_v56  ;;  %2625 = vst [vmem:[#allocation18_spill] sm:$0xff] %v1312_v59  ;;  %v1348_v8 = vadd.s32 %v1188_v40, %v228_v21  ;;  %v1351_v9 = vadd.s32 %v1188_v40, %v229_v22  ;;  %v1354_v10 = vadd.s32 %v1188_v40, %v230_v24 }
  0x3d   : > { %2626 = vst [vmem:[#allocation19_spill] sm:$0xff] %v1315_v60  ;;  %2627 = vst [vmem:[#allocation20_spill] sm:$0xff] %v1318_v62  ;;  %v1357_v11 = vadd.s32 %v1188_v40, %v231_v25  ;;  %v1360_v12 = vadd.s32 %v1188_v40, %v232_v26  ;;  %v1363_v13 = vadd.s32 %v1188_v40, %v233_v27 }
  0x3e   : > { %2628 = vst [vmem:[#allocation21_spill] sm:$0xff] %v1321_v63  ;;  %2629 = vst [vmem:[#allocation22_spill] sm:$0xff] %v1324_v0  ;;  %v1366_v14 = vadd.s32 %v1188_v40, %v234_v28  ;;  %v1369_v15 = vadd.s32 %v1188_v40, %v235_v29  ;;  %v1372_v16 = vadd.s32 %v1188_v40, %v236_v30 }
  0x3f   : > { %2630 = vst [vmem:[#allocation23_spill] sm:$0xff] %v1327_v1  ;;  %2631 = vst [vmem:[#allocation24_spill] sm:$0xff] %v1330_v2  ;;  %v1375_v17 = vadd.s32 %v1188_v40, %v237_v32  ;;  %v1378_v18 = vadd.s32 %v1188_v40, %v238_v33  ;;  %v1381_v19 = vadd.s32 %v1188_v40, %v239_v34  ;;  %v302_v32 = vshrl.u32 %v1262_v53, 16 }
  0x40   : > { %2632 = vst [vmem:[#allocation25_spill] sm:$0xff] %v1333_v3  ;;  %2633 = vst [vmem:[#allocation26_spill] sm:$0xff] %v1336_v4  ;;  %v1384_v20 = vadd.s32 %v1188_v40, %v240_v35  ;;  %v1387_v21 = vadd.s32 %v1188_v40, %v241_v36  ;;  %v1390_v22 = vadd.s32 %v1188_v40, %v242_v37  ;;  %v303_v33 = vshrl.u32 %v1265_v54, 16 }
  0x41   : > { %2634 = vst [vmem:[#allocation27_spill] sm:$0xff] %v1339_v5  ;;  %2635 = vst [vmem:[#allocation28_spill] sm:$0xff] %v1342_v6  ;;  %v1393_v24 = vadd.s32 %v1188_v40, %v243_v38  ;;  %v1396_v25 = vadd.s32 %v1188_v40, %v244_v41  ;;  %v1399_v26 = vadd.s32 %v1188_v40, %v245_v42  ;;  %v304_v34 = vshrl.u32 %v1269_v57, 16 }
  0x42   : > { %2636 = vst [vmem:[#allocation29_spill] sm:$0xff] %v1345_v7  ;;  %2637 = vst [vmem:[#allocation30_spill] sm:$0xff] %v1348_v8  ;;  %v1402_v27 = vadd.s32 %v1188_v40, %v246_v45  ;;  %v1405_v28 = vadd.s32 %v1188_v40, %v247_v46  ;;  %v1408_v29 = vadd.s32 %v1188_v40, %v248_v49  ;;  %v305_v35 = vshrl.u32 %v1272_v58, 16 }
  0x43   : > { %2638 = vst [vmem:[#allocation31_spill] sm:$0xff] %v1351_v9  ;;  %2639 = vst [vmem:[#allocation32_spill] sm:$0xff] %v1354_v10  ;;  %v1411_v30 = vadd.s32 %v1188_v40, %v249_v50  ;;  %v306_v36 = vshrl.u32 %v1276_v61, 16  ;;  %v307_v37 = vshrl.u32 %v1279_v23, 16  ;;  %v308_v38 = vshrl.u32 %v1282_v31, 16 }
  0x44   : > { %2640 = vst [vmem:[#allocation33_spill] sm:$0xff] %v1357_v11  ;;  %2641 = vst [vmem:[#allocation34_spill] sm:$0xff] %v1360_v12  ;;  %v309_v41 = vshrl.u32 %v1285_v39, 16  ;;  %v310_v42 = vshrl.u32 %v1288_v47, 16  ;;  %v311_v40 = vshrl.u32 %v1291_v43, 16  ;;  %v312_v45 = vshrl.u32 %v1294_v48, 16 }
  0x45   : > { %2642 = vst [vmem:[#allocation35_spill] sm:$0xff] %v1363_v13  ;;  %2643 = vst [vmem:[#allocation36_spill] sm:$0xff] %v1366_v14  ;;  %v313_v46 = vshrl.u32 %v1297_v44, 16  ;;  %v314_v49 = vshrl.u32 %v1300_v51, 16  ;;  %v315_v50 = vshrl.u32 %v1303_v52, 16  ;;  %v316_v61 = vshrl.u32 %v1306_v55, 16 }
  0x46   : > { %2644 = vst [vmem:[#allocation37_spill] sm:$0xff] %v1369_v15  ;;  %2645 = vst [vmem:[#allocation38_spill] sm:$0xff] %v1372_v16  ;;  %v317_v23 = vshrl.u32 %v1309_v56, 16  ;;  %v318_v31 = vshrl.u32 %v1312_v59, 16  ;;  %v319_v39 = vshrl.u32 %v1315_v60, 16  ;;  %v320_v47 = vshrl.u32 %v1318_v62, 16 }
  0x47   : > { %2646 = vst [vmem:[#allocation39_spill] sm:$0xff] %v1375_v17  ;;  %2647 = vst [vmem:[#allocation40_spill] sm:$0xff] %v1378_v18  ;;  %v321_v43 = vshrl.u32 %v1321_v63, 16  ;;  %v322_v48 = vshrl.u32 %v1324_v0, 16  ;;  %v323_v44 = vshrl.u32 %v1327_v1, 16  ;;  %v324_v51 = vshrl.u32 %v1330_v2, 16 }
  0x48   : > { %2648 = vst [vmem:[#allocation41_spill] sm:$0xff] %v1381_v19  ;;  %2649 = vst [vmem:[#allocation42_spill] sm:$0xff] %v1384_v20  ;;  %v325_v52 = vshrl.u32 %v1333_v3, 16  ;;  %v326_v55 = vshrl.u32 %v1336_v4, 16  ;;  %v327_v56 = vshrl.u32 %v1339_v5, 16  ;;  %v328_v59 = vshrl.u32 %v1342_v6, 16 }
  0x49   : > { %2650 = vst [vmem:[#allocation43_spill] sm:$0xff] %v1387_v21  ;;  %2651 = vst [vmem:[#allocation44_spill] sm:$0xff] %v1390_v22  ;;  %v329_v60 = vshrl.u32 %v1345_v7, 16  ;;  %v330_v62 = vshrl.u32 %v1348_v8, 16  ;;  %v331_v63 = vshrl.u32 %v1351_v9, 16  ;;  %v332_v0 = vshrl.u32 %v1354_v10, 16 }
  0x4a   : > { %2652 = vst [vmem:[#allocation45_spill] sm:$0xff] %v1393_v24  ;;  %2653 = vst [vmem:[#allocation46_spill] sm:$0xff] %v1396_v25  ;;  %v333_v1 = vshrl.u32 %v1357_v11, 16  ;;  %v334_v2 = vshrl.u32 %v1360_v12, 16  ;;  %v335_v3 = vshrl.u32 %v1363_v13, 16  ;;  %v336_v4 = vshrl.u32 %v1366_v14, 16 }
  0x4b   : > { %2654 = vst [vmem:[#allocation47_spill] sm:$0xff] %v1399_v26  ;;  %2655 = vst [vmem:[#allocation48_spill] sm:$0xff] %v1402_v27  ;;  %v337_v5 = vshrl.u32 %v1369_v15, 16  ;;  %v338_v6 = vshrl.u32 %v1372_v16, 16  ;;  %v339_v7 = vshrl.u32 %v1375_v17, 16  ;;  %v340_v8 = vshrl.u32 %v1378_v18, 16 }
  0x4c   : > { %2656 = vst [vmem:[#allocation49_spill] sm:$0xff] %v1405_v28  ;;  %2657 = vst [vmem:[#allocation50_spill] sm:$0xff] %v1408_v29  ;;  %v341_v9 = vshrl.u32 %v1381_v19, 16  ;;  %v342_v10 = vshrl.u32 %v1384_v20, 16  ;;  %v343_v11 = vshrl.u32 %v1387_v21, 16  ;;  %v344_v12 = vshrl.u32 %v1390_v22, 16 }
  0x4d   : > { %2658 = vst [vmem:[#allocation51_spill] sm:$0xff] %v1411_v30  ;;  %v345_v13 = vshrl.u32 %v1393_v24, 16  ;;  %v346_v14 = vshrl.u32 %v1396_v25, 16  ;;  %v347_v15 = vshrl.u32 %v1399_v26, 16  ;;  %v348_v16 = vshrl.u32 %v1402_v27, 16  ;;  %v2659_v26 = vld [vmem:[#allocation6_spill] sm:$0xff] }
  0x4e   : > { %v349_v17 = vshrl.u32 %v1405_v28, 16  ;;  %v350_v18 = vshrl.u32 %v1408_v29, 16  ;;  %v351_v19 = vshrl.u32 %v1411_v30, 16  ;;  %v1464_v20 = vxor.u32 %v302_v32, %v1262_v53  ;;  %v2660_v28 = vld [vmem:[#allocation7_spill] sm:$0xff]  ;;  %v2662_v29 = vld [vmem:[#allocation8_spill] sm:$0xff]  ;;  %v2663_v53 = vld [vmem:[#allocation9_spill] sm:$0xff] }
  0x4f   : > { %v1467_v21 = vxor.u32 %v303_v33, %v1265_v54  ;;  %v1470_v24 = vxor.u32 %v304_v34, %v1269_v57  ;;  %v1473_v25 = vxor.u32 %v305_v35, %v1272_v58  ;;  %v1476_v27 = vxor.u32 %v306_v36, %v2659_v26  ;;  %v2665_v54 = vld [vmem:[#allocation10_spill] sm:$0xff]  ;;  %v2666_v57 = vld [vmem:[#allocation11_spill] sm:$0xff]  ;;  %v2668_v58 = vld [vmem:[#allocation12_spill] sm:$0xff] }
  0x50   : > { %v1479_v22 = vxor.u32 %v307_v37, %v2660_v28  ;;  %v1482_v30 = vxor.u32 %v308_v38, %v2662_v29  ;;  %v1485_v32 = vxor.u32 %v309_v41, %v2663_v53  ;;  %v1488_v33 = vxor.u32 %v310_v42, %v2665_v54  ;;  %v2669_v26 = vld [vmem:[#allocation13_spill] sm:$0xff]  ;;  %v2671_v28 = vld [vmem:[#allocation14_spill] sm:$0xff]  ;;  %v2672_v29 = vld [vmem:[#allocation15_spill] sm:$0xff] }
  0x51   : > { %v1491_v34 = vxor.u32 %v311_v40, %v2666_v57  ;;  %v1494_v35 = vxor.u32 %v312_v45, %v2668_v58  ;;  %v1497_v36 = vxor.u32 %v313_v46, %v2669_v26  ;;  %v1500_v37 = vxor.u32 %v314_v49, %v2671_v28  ;;  %v2674_v41 = vld [vmem:[#allocation16_spill] sm:$0xff]  ;;  %v2675_v42 = vld [vmem:[#allocation17_spill] sm:$0xff]  ;;  %v2677_v40 = vld [vmem:[#allocation18_spill] sm:$0xff] }
  0x52   : > { %2661 = vst [vmem:[#allocation6_spill] sm:$0xff] %v1479_v22  ;;  %2664 = vst [vmem:[#allocation7_spill] sm:$0xff] %v1485_v32  ;;  %v1503_v38 = vxor.u32 %v315_v50, %v2672_v29  ;;  %v1506_v53 = vxor.u32 %v316_v61, %v2674_v41  ;;  %v1509_v54 = vxor.u32 %v317_v23, %v2675_v42  ;;  %v2678_v45 = vld [vmem:[#allocation19_spill] sm:$0xff]  ;;  %v2680_v46 = vld [vmem:[#allocation20_spill] sm:$0xff] }
  0x53   : > { %2667 = vst [vmem:[#allocation8_spill] sm:$0xff] %v1491_v34  ;;  %2670 = vst [vmem:[#allocation9_spill] sm:$0xff] %v1497_v36  ;;  %v1512_v57 = vxor.u32 %v318_v31, %v2677_v40  ;;  %v1515_v58 = vxor.u32 %v319_v39, %v2678_v45  ;;  %v1518_v26 = vxor.u32 %v320_v47, %v2680_v46  ;;  %v2681_v49 = vld [vmem:[#allocation21_spill] sm:$0xff]  ;;  %v2683_v50 = vld [vmem:[#allocation22_spill] sm:$0xff] }
  0x54   : > { %2673 = vst [vmem:[#allocation10_spill] sm:$0xff] %v1503_v38  ;;  %2676 = vst [vmem:[#allocation11_spill] sm:$0xff] %v1509_v54  ;;  %v1521_v28 = vxor.u32 %v321_v43, %v2681_v49  ;;  %v1524_v29 = vxor.u32 %v322_v48, %v2683_v50  ;;  %v2684_v61 = vld [vmem:[#allocation23_spill] sm:$0xff]  ;;  %v2686_v23 = vld [vmem:[#allocation24_spill] sm:$0xff] }
  0x55   : > { %2679 = vst [vmem:[#allocation12_spill] sm:$0xff] %v1515_v58  ;;  %v1527_v41 = vxor.u32 %v323_v44, %v2684_v61  ;;  %v1530_v42 = vxor.u32 %v324_v51, %v2686_v23  ;;  %v2688_v31 = vld [vmem:[#allocation25_spill] sm:$0xff]  ;;  %v2690_v39 = vld [vmem:[#allocation26_spill] sm:$0xff]  ;;  %v2692_v47 = vld [vmem:[#allocation27_spill] sm:$0xff] }
  0x56   : > { %2682 = vst [vmem:[#allocation13_spill] sm:$0xff] %v1521_v28  ;;  %v1533_v40 = vxor.u32 %v325_v52, %v2688_v31  ;;  %v1536_v45 = vxor.u32 %v326_v55, %v2690_v39  ;;  %v1539_v46 = vxor.u32 %v327_v56, %v2692_v47  ;;  %v2694_v43 = vld [vmem:[#allocation28_spill] sm:$0xff]  ;;  %v2696_v48 = vld [vmem:[#allocation29_spill] sm:$0xff]  ;;  %v2698_v44 = vld [vmem:[#allocation30_spill] sm:$0xff] }
  0x57   : > { %2685 = vst [vmem:[#allocation14_spill] sm:$0xff] %v1527_v41  ;;  %2687 = vst [vmem:[#allocation15_spill] sm:$0xff] %v1530_v42  ;;  %v1542_v49 = vxor.u32 %v328_v59, %v2694_v43  ;;  %v1545_v50 = vxor.u32 %v329_v60, %v2696_v48  ;;  %v1548_v61 = vxor.u32 %v330_v62, %v2698_v44  ;;  %v2700_v51 = vld [vmem:[#allocation31_spill] sm:$0xff]  ;;  %v2702_v52 = vld [vmem:[#allocation32_spill] sm:$0xff] }
  0x58   : > { %2689 = vst [vmem:[#allocation16_spill] sm:$0xff] %v1533_v40  ;;  %2691 = vst [vmem:[#allocation17_spill] sm:$0xff] %v1536_v45  ;;  %v1551_v23 = vxor.u32 %v331_v63, %v2700_v51  ;;  %v1554_v31 = vxor.u32 %v332_v0, %v2702_v52  ;;  %v2704_v55 = vld [vmem:[#allocation33_spill] sm:$0xff]  ;;  %v2706_v56 = vld [vmem:[#allocation34_spill] sm:$0xff] }
  0x59   : > { %2693 = vst [vmem:[#allocation18_spill] sm:$0xff] %v1539_v46  ;;  %2695 = vst [vmem:[#allocation19_spill] sm:$0xff] %v1542_v49  ;;  %v1557_v39 = vxor.u32 %v333_v1, %v2704_v55  ;;  %v1560_v47 = vxor.u32 %v334_v2, %v2706_v56  ;;  %v2708_v59 = vld [vmem:[#allocation35_spill] sm:$0xff]  ;;  %v2710_v60 = vld [vmem:[#allocation36_spill] sm:$0xff] }
  0x5a   : > { %2697 = vst [vmem:[#allocation20_spill] sm:$0xff] %v1545_v50  ;;  %2699 = vst [vmem:[#allocation21_spill] sm:$0xff] %v1548_v61  ;;  %v1563_v43 = vxor.u32 %v335_v3, %v2708_v59  ;;  %v1566_v48 = vxor.u32 %v336_v4, %v2710_v60  ;;  %v2712_v62 = vld [vmem:[#allocation37_spill] sm:$0xff]  ;;  %v2714_v63 = vld [vmem:[#allocation38_spill] sm:$0xff]  ;;  %v2533_v3 = vmul.u32 2146121005, %v1464_v20 }
  0x5b   : > { %2701 = vst [vmem:[#allocation22_spill] sm:$0xff] %v1551_v23  ;;  %2703 = vst [vmem:[#allocation23_spill] sm:$0xff] %v1554_v31  ;;  %v1569_v44 = vxor.u32 %v337_v5, %v2712_v62  ;;  %v1572_v51 = vxor.u32 %v338_v6, %v2714_v63  ;;  %v2716_v0 = vld [vmem:[#allocation39_spill] sm:$0xff]  ;;  %v2718_v1 = vld [vmem:[#allocation40_spill] sm:$0xff] }
  0x5c   : > { %2705 = vst [vmem:[#allocation24_spill] sm:$0xff] %v1557_v39  ;;  %2707 = vst [vmem:[#allocation25_spill] sm:$0xff] %v1560_v47  ;;  %v1575_v52 = vxor.u32 %v339_v7, %v2716_v0  ;;  %v1578_v55 = vxor.u32 %v340_v8, %v2718_v1  ;;  %v2720_v2 = vld [vmem:[#allocation41_spill] sm:$0xff]  ;;  %v2722_v59 = vld [vmem:[#allocation42_spill] sm:$0xff] }
  0x5d   : > { %2709 = vst [vmem:[#allocation26_spill] sm:$0xff] %v1563_v43  ;;  %2711 = vst [vmem:[#allocation27_spill] sm:$0xff] %v1566_v48  ;;  %v1581_v56 = vxor.u32 %v341_v9, %v2720_v2  ;;  %v1586_v60 = vxor.u32 %v342_v10, %v2722_v59  ;;  %v2724_v5 = vld [vmem:[#allocation43_spill] sm:$0xff]  ;;  %v2725_v63 = vld [vmem:[#allocation44_spill] sm:$0xff] }
  0x5e   : > { %2713 = vst [vmem:[#allocation28_spill] sm:$0xff] %v1569_v44  ;;  %2715 = vst [vmem:[#allocation29_spill] sm:$0xff] %v1572_v51  ;;  %v1589_v62 = vxor.u32 %v343_v11, %v2724_v5  ;;  %v1594_v8 = vxor.u32 %v344_v12, %v2725_v63  ;;  %v2727_v0 = vld [vmem:[#allocation45_spill] sm:$0xff]  ;;  %v2728_v4 = vld [vmem:[#allocation46_spill] sm:$0xff]  ;;  %v2535_v5 = vmul.u32 2146121005, %v1482_v30 }
  0x5f   : > { %2717 = vst [vmem:[#allocation30_spill] sm:$0xff] %v1575_v52  ;;  %2719 = vst [vmem:[#allocation31_spill] sm:$0xff] %v1578_v55  ;;  %v1597_v9 = vxor.u32 %v345_v13, %v2727_v0  ;;  %v1602_v10 = vxor.u32 %v346_v14, %v2728_v4  ;;  %v2729_v59 = vld [vmem:[#allocation47_spill] sm:$0xff]  ;;  %v2731_v6 = vld [vmem:[#allocation48_spill] sm:$0xff] }
  0x60   : > { %2721 = vst [vmem:[#allocation32_spill] sm:$0xff] %v1581_v56  ;;  %2723 = vst [vmem:[#allocation33_spill] sm:$0xff] %v1586_v60  ;;  %v1605_v11 = vxor.u32 %v347_v15, %v2729_v59  ;;  %v1610_v12 = vxor.u32 %v348_v16, %v2731_v6  ;;  %v2733_v63 = vld [vmem:[#allocation49_spill] sm:$0xff]  ;;  %v2734_v1 = vld [vmem:[#allocation50_spill] sm:$0xff]  ;;  %v2740_v16 = vmul.u32 2146121005, %v1473_v25 }
  0x61   : > { %2726 = vst [vmem:[#allocation34_spill] sm:$0xff] %v1594_v8  ;;  %v1613_v13 = vxor.u32 %v349_v17, %v2733_v63  ;;  %v1618_v14 = vxor.u32 %v350_v18, %v2734_v1  ;;  %v2736_v4 = vld [vmem:[#allocation51_spill] sm:$0xff]  ;;  %v1629_v17 = vshrl.u32 %v2533_v3, 15  ;;  %v2738_v63 = vmul.u32 2146121005, %v1467_v21 }
  0x62   : > { %2730 = vst [vmem:[#allocation35_spill] sm:$0xff] %v1605_v11  ;;  %2732 = vst [vmem:[#allocation36_spill] sm:$0xff] %v1610_v12  ;;  %v1621_v15 = vxor.u32 %v351_v19, %v2736_v4  ;;  %v2739_v1 = vmul.u32 2146121005, %v1470_v24  ;;  %v1643_v7 = vshrl.u32 %v2740_v16, 15  ;;  %v1659_v16 = vshrl.u32 %v2535_v5, 15 }
  0x63   : > { %2735 = vst [vmem:[#allocation37_spill] sm:$0xff] %v1618_v14  ;;  %v1633_v2 = vshrl.u32 %v2738_v63, 15  ;;  %v2742_v59 = vmul.u32 2146121005, %v1476_v27  ;;  %v2743_v18 = vmul.u32 2146121005, %v1479_v22 }
  0x64   : > { %2737 = vst [vmem:[#allocation38_spill] sm:$0xff] %v1621_v15  ;;  %v1639_v4 = vshrl.u32 %v2739_v1, 15  ;;  %2741 = vst [vmem:[#allocation39_spill] sm:$0xff] %v1643_v7  ;;  %v2745_v6 = vmul.u32 2146121005, %v1485_v32 }
  0x65   : > { %v1649_v63 = vshrl.u32 %v2742_v59, 15  ;;  %v1653_v0 = vshrl.u32 %v2743_v18, 15  ;;  %v2747_v22 = vmul.u32 2146121005, %v1488_v33  ;;  %v2748_v19 = vmul.u32 2146121005, %v1491_v34 }
  0x66   : > { %v1663_v7 = vshrl.u32 %v2745_v6, 15  ;;  %v2750_v32 = vmul.u32 2146121005, %v1494_v35  ;;  %v2751_v3 = vmul.u32 2146121005, %v1497_v36 }
  0x67   : > { %2744 = vst [vmem:[#allocation40_spill] sm:$0xff] %v1653_v0  ;;  %v1669_v18 = vshrl.u32 %v2747_v22, 15  ;;  %v1673_v0 = vshrl.u32 %v2748_v19, 15  ;;  %v2753_v34 = vmul.u32 2146121005, %v1500_v37 }
  0x68   : > { %2746 = vst [vmem:[#allocation41_spill] sm:$0xff] %v1663_v7  ;;  %v1679_v6 = vshrl.u32 %v2750_v32, 15  ;;  %v1683_v7 = vshrl.u32 %v2751_v3, 15  ;;  %v2754_v1 = vmul.u32 2146121005, %v1503_v38 }
  0x69   : > { %2749 = vst [vmem:[#allocation42_spill] sm:$0xff] %v1673_v0  ;;  %v1689_v19 = vshrl.u32 %v2753_v34, 15  ;;  %v2756_v36 = vmul.u32 2146121005, %v1506_v53  ;;  %v2757_v59 = vmul.u32 2146121005, %v1509_v54 }
  0x6a   : > { %2752 = vst [vmem:[#allocation43_spill] sm:$0xff] %v1683_v7  ;;  %v1693_v0 = vshrl.u32 %v2754_v1, 15  ;;  %v2759_v38 = vmul.u32 2146121005, %v1512_v57  ;;  %v2760_v5 = vmul.u32 2146121005, %v1515_v58 }
  0x6b   : > { %v1699_v3 = vshrl.u32 %v2756_v36, 15  ;;  %v1703_v7 = vshrl.u32 %v2757_v59, 15  ;;  %v2762_v54 = vmul.u32 2146121005, %v1518_v26  ;;  %v2763_v22 = vmul.u32 2146121005, %v1521_v28 }
  0x6c   : > { %2755 = vst [vmem:[#allocation44_spill] sm:$0xff] %v1693_v0  ;;  %v1709_v1 = vshrl.u32 %v2759_v38, 15  ;;  %v1713_v0 = vshrl.u32 %v2760_v5, 15  ;;  %v2765_v58 = vmul.u32 2146121005, %v1524_v29 }
  0x6d   : > { %2758 = vst [vmem:[#allocation45_spill] sm:$0xff] %v1703_v7  ;;  %v1719_v59 = vshrl.u32 %v2762_v54, 15  ;;  %v1723_v7 = vshrl.u32 %v2763_v22, 15  ;;  %v2767_v32 = vmul.u32 2146121005, %v1527_v41 }
  0x6e   : > { %2761 = vst [vmem:[#allocation46_spill] sm:$0xff] %v1713_v0  ;;  %v1729_v5 = vshrl.u32 %v2765_v58, 15  ;;  %v2769_v28 = vmul.u32 2146121005, %v1530_v42  ;;  %v2771_v34 = vmul.u32 2146121005, %v1533_v40 }
  0x6f   : > { %2764 = vst [vmem:[#allocation47_spill] sm:$0xff] %v1723_v7  ;;  %v1733_v0 = vshrl.u32 %v2767_v32, 15  ;;  %v2773_v41 = vmul.u32 2146121005, %v1536_v45  ;;  %v2777_v45 = vmul.u32 2146121005, %v1548_v61 }
  0x70   : > { %2766 = vst [vmem:[#allocation48_spill] sm:$0xff] %v1729_v5  ;;  %v1739_v22 = vshrl.u32 %v2769_v28, 15  ;;  %v1743_v7 = vshrl.u32 %v2771_v34, 15  ;;  %v2775_v28 = vmul.u32 2146121005, %v1542_v49 }
  0x71   : > { %2768 = vst [vmem:[#allocation49_spill] sm:$0xff] %v1733_v0  ;;  %v476_v32 = vshrl.u32 %v2773_v41, 15  ;;  %v2774_v0 = vmul.u32 2146121005, %v1539_v46  ;;  %v2776_v34 = vmul.u32 2146121005, %v1545_v50 }
  0x72   : > { %2770 = vst [vmem:[#allocation50_spill] sm:$0xff] %v1739_v22  ;;  %2772 = vst [vmem:[#allocation51_spill] sm:$0xff] %v1743_v7  ;;  %v478_v22 = vshrl.u32 %v2775_v28, 15  ;;  %v480_v41 = vshrl.u32 %v2777_v45, 15  ;;  %v2778_v46 = vmul.u32 2146121005, %v1551_v23 }
  0x73   : > { %v477_v36 = vshrl.u32 %v2774_v0, 15  ;;  %v479_v7 = vshrl.u32 %v2776_v34, 15  ;;  %v2779_v49 = vmul.u32 2146121005, %v1554_v31  ;;  %v2780_v50 = vmul.u32 2146121005, %v1557_v39 }
  0x74   : > { %v481_v0 = vshrl.u32 %v2778_v46, 15  ;;  %v2781_v61 = vmul.u32 2146121005, %v1560_v47  ;;  %v2782_v23 = vmul.u32 2146121005, %v1563_v43 }
  0x75   : > { %v482_v28 = vshrl.u32 %v2779_v49, 15  ;;  %v483_v34 = vshrl.u32 %v2780_v50, 15  ;;  %v2783_v31 = vmul.u32 2146121005, %v1566_v48  ;;  %v2784_v39 = vmul.u32 2146121005, %v1569_v44 }
  0x76   : > { %v484_v45 = vshrl.u32 %v2781_v61, 15  ;;  %v485_v46 = vshrl.u32 %v2782_v23, 15  ;;  %v2785_v47 = vmul.u32 2146121005, %v1572_v51  ;;  %v2786_v43 = vmul.u32 2146121005, %v1575_v52 }
  0x77   : > { %v486_v49 = vshrl.u32 %v2783_v31, 15  ;;  %v487_v50 = vshrl.u32 %v2784_v39, 15  ;;  %v2787_v54 = vmul.u32 2146121005, %v1578_v55  ;;  %v2788_v42 = vmul.u32 2146121005, %v1581_v56 }
  0x78   : > { %v488_v61 = vshrl.u32 %v2785_v47, 15  ;;  %v489_v23 = vshrl.u32 %v2786_v43, 15  ;;  %v2789_v31 = vmul.u32 2146121005, %v1586_v60  ;;  %v2790_v39 = vmul.u32 2146121005, %v1589_v62 }
  0x79   : > { %v490_v40 = vshrl.u32 %v2787_v54, 15  ;;  %v491_v48 = vshrl.u32 %v2788_v42, 15  ;;  %v2791_v58 = vmul.u32 2146121005, %v1594_v8  ;;  %v2792_v47 = vmul.u32 2146121005, %v1597_v9 }
  0x7a   : > { %v492_v44 = vshrl.u32 %v2789_v31, 15  ;;  %v493_v38 = vshrl.u32 %v2790_v39, 15  ;;  %v2793_v43 = vmul.u32 2146121005, %v1602_v10  ;;  %v2794_v54 = vmul.u32 2146121005, %v1605_v11 }
  0x7b   : > { %v494_v5 = vshrl.u32 %v2791_v58, 15  ;;  %v495_v51 = vshrl.u32 %v2792_v47, 15  ;;  %v2795_v42 = vmul.u32 2146121005, %v1610_v12  ;;  %v2796_v31 = vmul.u32 2146121005, %v1613_v13 }
  0x7c   : > { %v496_v52 = vshrl.u32 %v2793_v43, 15  ;;  %v497_v55 = vshrl.u32 %v2794_v54, 15  ;;  %v2797_v39 = vmul.u32 2146121005, %v1464_v20  ;;  %v2798_v58 = vmul.u32 2146121005, %v1467_v21 }
  0x7d   : > { %v498_v56 = vshrl.u32 %v2795_v42, 15  ;;  %v499_v60 = vshrl.u32 %v2796_v31, 15  ;;  %v2799_v43 = vmul.u32 2146121005, %v1618_v14  ;;  %v2800_v54 = vmul.u32 2146121005, %v1621_v15 }
  0x7e   : > { %v1810_v8 = vxor.u32 %v1629_v17, %v2797_v39  ;;  %v1815_v47 = vxor.u32 %v1633_v2, %v2798_v58  ;;  %v2801_v42 = vmul.u32 2146121005, %v1470_v24  ;;  %v2802_v20 = vmul.u32 2146121005, %v1473_v25  ;;  %v2803_v17 = vld [vmem:[#allocation39_spill] sm:$0xff]  ;;  %v2805_v58 = vld [vmem:[#allocation6_spill] sm:$0xff] }
  0x7f   : > { %v500_v11 = vshrl.u32 %v2799_v43, 15  ;;  %v501_v12 = vshrl.u32 %v2800_v54, 15  ;;  %v2804_v21 = vmul.u32 2146121005, %v1476_v27  ;;  %v2806_v43 = vmul.u32 2146121005, %v2805_v58 }
  0x80   : > { %v1824_v31 = vxor.u32 %v1639_v4, %v2801_v42  ;;  %v1829_v39 = vxor.u32 %v2803_v17, %v2802_v20  ;;  %v2807_v14 = vld [vmem:[#allocation40_spill] sm:$0xff]  ;;  %v2808_v24 = vmul.u32 2146121005, %v1482_v30  ;;  %v2809_v54 = vld [vmem:[#allocation7_spill] sm:$0xff]  ;;  %v2811_v42 = vld [vmem:[#allocation41_spill] sm:$0xff] }
  0x81   : > { %v1834_v2 = vxor.u32 %v1649_v63, %v2804_v21  ;;  %v1839_v15 = vxor.u32 %v2807_v14, %v2806_v43  ;;  %v2810_v25 = vmul.u32 2146121005, %v2809_v54  ;;  %v2813_v27 = vmul.u32 2146121005, %v1488_v33  ;;  %v2815_v17 = vld [vmem:[#allocation8_spill] sm:$0xff]  ;;  %v2817_v58 = vld [vmem:[#allocation42_spill] sm:$0xff] }
  0x82   : > { %v1844_v4 = vxor.u32 %v1659_v16, %v2808_v24  ;;  %v2816_v21 = vmul.u32 2146121005, %v2815_v17  ;;  %v2819_v30 = vmul.u32 2146121005, %v1494_v35  ;;  %v2820_v43 = vld [vmem:[#allocation9_spill] sm:$0xff]  ;;  %v2822_v54 = vld [vmem:[#allocation43_spill] sm:$0xff] }
  0x83   : > { %v1849_v20 = vxor.u32 %v2811_v42, %v2810_v25  ;;  %v1854_v63 = vxor.u32 %v1669_v18, %v2813_v27  ;;  %v2821_v24 = vmul.u32 2146121005, %v2820_v43  ;;  %v2824_v33 = vmul.u32 2146121005, %v1500_v37  ;;  %v2825_v42 = vld [vmem:[#allocation10_spill] sm:$0xff]  ;;  %v2827_v17 = vld [vmem:[#allocation44_spill] sm:$0xff] }
  0x84   : > { %v1859_v14 = vxor.u32 %v2817_v58, %v2816_v21  ;;  %v1864_v16 = vxor.u32 %v1679_v6, %v2819_v30  ;;  %v2826_v27 = vmul.u32 2146121005, %v2825_v42  ;;  %v2829_v35 = vmul.u32 2146121005, %v1506_v53  ;;  %v2830_v58 = vld [vmem:[#allocation11_spill] sm:$0xff]  ;;  %v2832_v43 = vld [vmem:[#allocation45_spill] sm:$0xff] }
  0x85   : > { %2812 = vst [vmem:[#allocation39_spill] sm:$0xff] %v1849_v20  ;;  %2814 = vst [vmem:[#allocation6_spill] sm:$0xff] %v1854_v63  ;;  %v1869_v25 = vxor.u32 %v2822_v54, %v2821_v24  ;;  %v1874_v18 = vxor.u32 %v1689_v19, %v2824_v33  ;;  %v2831_v30 = vmul.u32 2146121005, %v2830_v58  ;;  %v2834_v37 = vmul.u32 2146121005, %v1512_v57 }
  0x86   : > { %2818 = vst [vmem:[#allocation40_spill] sm:$0xff] %v1859_v14  ;;  %v1879_v21 = vxor.u32 %v2827_v17, %v2826_v27  ;;  %v1884_v6 = vxor.u32 %v1699_v3, %v2829_v35  ;;  %v2836_v54 = vld [vmem:[#allocation12_spill] sm:$0xff]  ;;  %v2838_v42 = vld [vmem:[#allocation46_spill] sm:$0xff]  ;;  %v2840_v53 = vmul.u32 2146121005, %v1518_v26  ;;  %v2842_v17 = vld [vmem:[#allocation13_spill] sm:$0xff] }
  0x87   : > { %2823 = vst [vmem:[#allocation7_spill] sm:$0xff] %v1869_v25  ;;  %v1889_v24 = vxor.u32 %v2832_v43, %v2831_v30  ;;  %v1894_v19 = vxor.u32 %v1709_v1, %v2834_v37  ;;  %v2837_v33 = vmul.u32 2146121005, %v2836_v54  ;;  %v2843_v35 = vmul.u32 2146121005, %v2842_v17  ;;  %v2844_v58 = vld [vmem:[#allocation47_spill] sm:$0xff] }
  0x88   : > { %2828 = vst [vmem:[#allocation41_spill] sm:$0xff] %v1879_v21  ;;  %v1904_v3 = vxor.u32 %v1719_v59, %v2840_v53  ;;  %v2846_v57 = vmul.u32 2146121005, %v1524_v29  ;;  %v2847_v43 = vld [vmem:[#allocation48_spill] sm:$0xff]  ;;  %v2848_v37 = vld [vmem:[#allocation14_spill] sm:$0xff] }
  0x89   : > { %2833 = vst [vmem:[#allocation8_spill] sm:$0xff] %v1889_v24  ;;  %2835 = vst [vmem:[#allocation42_spill] sm:$0xff] %v1894_v19  ;;  %v1899_v27 = vxor.u32 %v2838_v42, %v2837_v33  ;;  %v1909_v30 = vxor.u32 %v2844_v58, %v2843_v35  ;;  %v2849_v54 = vmul.u32 2146121005, %v2848_v37  ;;  %v2850_v19 = vld [vmem:[#allocation49_spill] sm:$0xff]  ;;  %v2852_v42 = vld [vmem:[#allocation15_spill] sm:$0xff] }
  0x8a   : > { %2841 = vst [vmem:[#allocation43_spill] sm:$0xff] %v1904_v3  ;;  %v1914_v1 = vxor.u32 %v2847_v43, %v2846_v57  ;;  %v2853_v26 = vmul.u32 2146121005, %v2852_v42  ;;  %v2856_v53 = vld [vmem:[#allocation16_spill] sm:$0xff]  ;;  %v2858_v3 = vld [vmem:[#allocation51_spill] sm:$0xff]  ;;  %v2860_v58 = vld [vmem:[#allocation17_spill] sm:$0xff] }
  0x8b   : > { %2839 = vst [vmem:[#allocation9_spill] sm:$0xff] %v1899_v27  ;;  %2845 = vst [vmem:[#allocation10_spill] sm:$0xff] %v1909_v30  ;;  %v1919_v33 = vxor.u32 %v2850_v19, %v2849_v54  ;;  %v2854_v27 = vld [vmem:[#allocation50_spill] sm:$0xff]  ;;  %v2857_v17 = vmul.u32 2146121005, %v2856_v53  ;;  %v2865_v19 = vld [vmem:[#allocation19_spill] sm:$0xff] }
  0x8c   : > { %v1924_v59 = vxor.u32 %v2854_v27, %v2853_v26  ;;  %v2861_v29 = vmul.u32 2146121005, %v2860_v58  ;;  %v2862_v57 = vld [vmem:[#allocation18_spill] sm:$0xff]  ;;  %v2866_v54 = vmul.u32 2146121005, %v2865_v19  ;;  %v2867_v42 = vld [vmem:[#allocation20_spill] sm:$0xff] }
  0x8d   : > { %2851 = vst [vmem:[#allocation44_spill] sm:$0xff] %v1919_v33  ;;  %v1929_v35 = vxor.u32 %v2858_v3, %v2857_v17  ;;  %v2863_v43 = vmul.u32 2146121005, %v2862_v57  ;;  %v2868_v27 = vmul.u32 2146121005, %v2867_v42  ;;  %v2870_v53 = vld [vmem:[#allocation21_spill] sm:$0xff] }
  0x8e   : > { %2855 = vst [vmem:[#allocation11_spill] sm:$0xff] %v1924_v59  ;;  %v1933_v30 = vxor.u32 %v476_v32, %v2861_v29  ;;  %v1941_v33 = vxor.u32 %v478_v22, %v2866_v54  ;;  %v2871_v59 = vmul.u32 2146121005, %v2870_v53  ;;  %v2872_v17 = vld [vmem:[#allocation22_spill] sm:$0xff]  ;;  %v2875_v29 = vld [vmem:[#allocation23_spill] sm:$0xff]  ;;  %v2881_v54 = vld [vmem:[#allocation25_spill] sm:$0xff] }
  0x8f   : > { %2859 = vst [vmem:[#allocation45_spill] sm:$0xff] %v1929_v35  ;;  %v1937_v37 = vxor.u32 %v477_v36, %v2863_v43  ;;  %v1945_v26 = vxor.u32 %v479_v7, %v2868_v27  ;;  %v2873_v58 = vmul.u32 2146121005, %v2872_v17  ;;  %v2876_v57 = vmul.u32 2146121005, %v2875_v29  ;;  %v2878_v43 = vld [vmem:[#allocation24_spill] sm:$0xff] }
  0x90   : > { %v1949_v3 = vxor.u32 %v480_v41, %v2871_v59  ;;  %v2879_v19 = vmul.u32 2146121005, %v2878_v43  ;;  %v2882_v42 = vmul.u32 2146121005, %v2881_v54  ;;  %v2884_v27 = vld [vmem:[#allocation26_spill] sm:$0xff]  ;;  %v2887_v59 = vld [vmem:[#allocation27_spill] sm:$0xff] }
  0x91   : > { %2864 = vst [vmem:[#allocation12_spill] sm:$0xff] %v1937_v37  ;;  %2869 = vst [vmem:[#allocation46_spill] sm:$0xff] %v1945_v26  ;;  %v1953_v32 = vxor.u32 %v481_v0, %v2873_v58  ;;  %v1957_v36 = vxor.u32 %v482_v28, %v2876_v57  ;;  %v2885_v53 = vmul.u32 2146121005, %v2884_v27  ;;  %v2888_v17 = vmul.u32 2146121005, %v2887_v59 }
  0x92   : > { %v1961_v22 = vxor.u32 %v483_v34, %v2879_v19  ;;  %v1965_v7 = vxor.u32 %v484_v45, %v2882_v42  ;;  %v2889_v58 = vld [vmem:[#allocation28_spill] sm:$0xff]  ;;  %v2892_v57 = vld [vmem:[#allocation29_spill] sm:$0xff]  ;;  %v2894_v19 = vld [vmem:[#allocation30_spill] sm:$0xff] }
  0x93   : > { %2874 = vst [vmem:[#allocation13_spill] sm:$0xff] %v1953_v32  ;;  %2877 = vst [vmem:[#allocation47_spill] sm:$0xff] %v1957_v36  ;;  %v1969_v41 = vxor.u32 %v485_v46, %v2885_v53  ;;  %v1973_v0 = vxor.u32 %v486_v49, %v2888_v17  ;;  %v2890_v29 = vmul.u32 2146121005, %v2889_v58  ;;  %v2893_v43 = vmul.u32 2146121005, %v2892_v57 }
  0x94   : > { %2880 = vst [vmem:[#allocation48_spill] sm:$0xff] %v1961_v22  ;;  %2883 = vst [vmem:[#allocation14_spill] sm:$0xff] %v1965_v7  ;;  %v2895_v54 = vmul.u32 2146121005, %v2894_v19  ;;  %v2897_v42 = vld [vmem:[#allocation31_spill] sm:$0xff]  ;;  %v2900_v53 = vld [vmem:[#allocation32_spill] sm:$0xff] }
  0x95   : > { %2886 = vst [vmem:[#allocation49_spill] sm:$0xff] %v1969_v41  ;;  %v1977_v28 = vxor.u32 %v487_v50, %v2890_v29  ;;  %v1981_v34 = vxor.u32 %v488_v61, %v2893_v43  ;;  %v2898_v27 = vmul.u32 2146121005, %v2897_v42  ;;  %v2901_v59 = vmul.u32 2146121005, %v2900_v53  ;;  %v2903_v17 = vld [vmem:[#allocation33_spill] sm:$0xff] }
  0x96   : > { %v1985_v45 = vxor.u32 %v489_v23, %v2895_v54  ;;  %v2904_v58 = vmul.u32 2146121005, %v2903_v17  ;;  %v2905_v29 = vmul.u32 2146121005, %v1589_v62  ;;  %v2906_v43 = vld [vmem:[#allocation34_spill] sm:$0xff] }
  0x97   : > { %2891 = vst [vmem:[#allocation15_spill] sm:$0xff] %v1977_v28  ;;  %v1989_v46 = vxor.u32 %v490_v40, %v2898_v27  ;;  %v1993_v49 = vxor.u32 %v491_v48, %v2901_v59  ;;  %v2575_v57 = vmul.u32 2221713035, %v1810_v8  ;;  %v2574_v23 = vmul.u32 2221713035, %v1815_v47  ;;  %v2912_v27 = vld [vmem:[#allocation35_spill] sm:$0xff] }
  0x98   : > { %2896 = vst [vmem:[#allocation50_spill] sm:$0xff] %v1985_v45  ;;  %v1997_v50 = vxor.u32 %v492_v44, %v2904_v58  ;;  %v2001_v61 = vxor.u32 %v493_v38, %v2905_v29  ;;  %v2907_v19 = vmul.u32 2146121005, %v2906_v43  ;;  %v2909_v54 = vmul.u32 2146121005, %v1597_v9  ;;  %v2915_v58 = vld [vmem:[#allocation36_spill] sm:$0xff] }
  0x99   : > { %2899 = vst [vmem:[#allocation16_spill] sm:$0xff] %v1989_v46  ;;  %2902 = vst [vmem:[#allocation51_spill] sm:$0xff] %v1993_v49  ;;  %v2576_v42 = vmul.u32 2221713035, %v1824_v31  ;;  %v2577_v44 = vmul.u32 2221713035, %v1829_v39 }
  0x9a   : > { %v2007_v40 = vxor.u32 %v494_v5, %v2907_v19  ;;  %v2011_v48 = vxor.u32 %v495_v51, %v2909_v54  ;;  %v2911_v62 = vmul.u32 2146121005, %v1602_v10  ;;  %v2913_v53 = vmul.u32 2146121005, %v2912_v27  ;;  %v2920_v19 = vld [vmem:[#allocation37_spill] sm:$0xff] }
  0x9b   : > { %v2578_v17 = vmul.u32 2221713035, %v1834_v2  ;;  %v2579_v5 = vmul.u32 2221713035, %v1839_v15 }
  0x9c   : > { %2908 = vst [vmem:[#allocation17_spill] sm:$0xff] %v2007_v40  ;;  %2910 = vst [vmem:[#allocation18_spill] sm:$0xff] %v2011_v48  ;;  %v2017_v38 = vxor.u32 %v496_v52, %v2911_v62  ;;  %v2021_v59 = vxor.u32 %v497_v55, %v2913_v53  ;;  %v2916_v9 = vmul.u32 2146121005, %v2915_v58  ;;  %v2918_v29 = vmul.u32 2146121005, %v1613_v13 }
  0x9d   : > { %v2581_v10 = vmul.u32 2221713035, %v1844_v4  ;;  %v2583_v52 = vmul.u32 2221713035, %v1849_v20  ;;  %v2922_v62 = vld [vmem:[#allocation38_spill] sm:$0xff] }
  0x9e   : > { %2914 = vst [vmem:[#allocation19_spill] sm:$0xff] %v2021_v59  ;;  %v2027_v51 = vxor.u32 %v498_v56, %v2916_v9  ;;  %v2031_v43 = vxor.u32 %v499_v60, %v2918_v29  ;;  %v2921_v54 = vmul.u32 2146121005, %v2920_v19  ;;  %v2923_v27 = vmul.u32 2146121005, %v2922_v62  ;;  %v2937_v56 = vld [vmem:[#allocation11_spill] sm:$0xff] }
  0x9f   : > { %v2585_v58 = vmul.u32 2221713035, %v1854_v63  ;;  %v2049_v9 = vshrl.u32 %v2575_v57, 16  ;;  %v2059_v19 = vshrl.u32 %v2576_v42, 16  ;;  %v2073_v57 = vshrl.u32 %v2579_v5, 16  ;;  %v2926_v42 = vld [vmem:[#allocation9_spill] sm:$0xff] }
  0xa0   : > { %2917 = vst [vmem:[#allocation20_spill] sm:$0xff] %v2027_v51  ;;  %2919 = vst [vmem:[#allocation21_spill] sm:$0xff] %v2031_v43  ;;  %v2037_v55 = vxor.u32 %v500_v11, %v2921_v54  ;;  %v2041_v53 = vxor.u32 %v501_v12, %v2923_v27  ;;  %v2053_v11 = vshrl.u32 %v2574_v23, 16  ;;  %v2063_v54 = vshrl.u32 %v2577_v44, 16  ;;  %v2925_v12 = vld [vmem:[#allocation42_spill] sm:$0xff]  ;;  %v2929_v27 = vld [vmem:[#allocation43_spill] sm:$0xff] }
  0xa1   : > { %v2069_v23 = vshrl.u32 %v2578_v17, 16  ;;  %v2079_v44 = vshrl.u32 %v2581_v10, 16  ;;  %v2083_v62 = vshrl.u32 %v2583_v52, 16  ;;  %v2930_v17 = vld [vmem:[#allocation10_spill] sm:$0xff]  ;;  %v2089_v5 = vshrl.u32 %v2585_v58, 16  ;;  %v2933_v10 = vld [vmem:[#allocation44_spill] sm:$0xff] }
  0xa2   : > { %2924 = vst [vmem:[#allocation22_spill] sm:$0xff] %v2041_v53  ;;  %v2931_v29 = vmul.u32 2221713035, %v1859_v14  ;;  %v2934_v20 = vmul.u32 2221713035, %v1864_v16 }
  0xa3   : > { %2927 = vst [vmem:[#allocation23_spill] sm:$0xff] %v2079_v44  ;;  %2928 = vst [vmem:[#allocation24_spill] sm:$0xff] %v2083_v62  ;;  %v2935_v13 = vmul.u32 2221713035, %v1869_v25  ;;  %v2938_v14 = vmul.u32 2221713035, %v1874_v18 }
  0xa4   : > { %v2093_v53 = vshrl.u32 %v2931_v29, 16  ;;  %v2099_v52 = vshrl.u32 %v2934_v20, 16  ;;  %v2939_v60 = vmul.u32 2221713035, %v1879_v21  ;;  %v2941_v25 = vmul.u32 2221713035, %v1884_v6 }
  0xa5   : > { %v2103_v62 = vshrl.u32 %v2935_v13, 16  ;;  %v2109_v29 = vshrl.u32 %v2938_v14, 16  ;;  %v2942_v63 = vmul.u32 2221713035, %v1889_v24  ;;  %v2944_v21 = vmul.u32 2221713035, %v2925_v12 }
  0xa6   : > { %2932 = vst [vmem:[#allocation25_spill] sm:$0xff] %v2093_v53  ;;  %v2113_v53 = vshrl.u32 %v2939_v60, 16  ;;  %v2119_v13 = vshrl.u32 %v2941_v25, 16  ;;  %v2945_v44 = vmul.u32 2221713035, %v2926_v42 }
  0xa7   : > { %2936 = vst [vmem:[#allocation26_spill] sm:$0xff] %v2103_v62  ;;  %v2123_v62 = vshrl.u32 %v2942_v63, 16  ;;  %v2129_v60 = vshrl.u32 %v2944_v21, 16  ;;  %v2947_v24 = vmul.u32 2221713035, %v2929_v27 }
  0xa8   : > { %2940 = vst [vmem:[#allocation27_spill] sm:$0xff] %v2113_v53  ;;  %v2133_v53 = vshrl.u32 %v2945_v44, 16  ;;  %v2948_v58 = vmul.u32 2221713035, %v2930_v17  ;;  %v2950_v42 = vmul.u32 2221713035, %v1914_v1 }
  0xa9   : > { %2943 = vst [vmem:[#allocation28_spill] sm:$0xff] %v2123_v62  ;;  %v2139_v63 = vshrl.u32 %v2947_v24, 16  ;;  %v2951_v20 = vmul.u32 2221713035, %v2933_v10  ;;  %v2953_v17 = vmul.u32 2221713035, %v2937_v56 }
  0xaa   : > { %2946 = vst [vmem:[#allocation29_spill] sm:$0xff] %v2133_v53  ;;  %v2143_v62 = vshrl.u32 %v2948_v58, 16  ;;  %v2149_v44 = vshrl.u32 %v2950_v42, 16  ;;  %v2954_v14 = vmul.u32 2221713035, %v1929_v35 }
  0xab   : > { %v2153_v53 = vshrl.u32 %v2951_v20, 16  ;;  %v2159_v58 = vshrl.u32 %v2953_v17, 16  ;;  %v2956_v10 = vmul.u32 2221713035, %v1933_v30  ;;  %v2957_v25 = vmul.u32 2221713035, %v1937_v37 }
  0xac   : > { %2949 = vst [vmem:[#allocation30_spill] sm:$0xff] %v2143_v62  ;;  %v2163_v62 = vshrl.u32 %v2954_v14, 16  ;;  %v2959_v35 = vmul.u32 2221713035, %v1941_v33  ;;  %v2960_v21 = vmul.u32 2221713035, %v1945_v26 }
  0xad   : > { %2952 = vst [vmem:[#allocation31_spill] sm:$0xff] %v2153_v53  ;;  %v2169_v20 = vshrl.u32 %v2956_v10, 16  ;;  %v2173_v53 = vshrl.u32 %v2957_v25, 16  ;;  %v2962_v37 = vmul.u32 2221713035, %v1949_v3 }
  0xae   : > { %2955 = vst [vmem:[#allocation32_spill] sm:$0xff] %v2163_v62  ;;  %v2179_v14 = vshrl.u32 %v2959_v35, 16  ;;  %v2183_v62 = vshrl.u32 %v2960_v21, 16  ;;  %v2963_v24 = vmul.u32 2221713035, %v1953_v32 }
  0xaf   : > { %2958 = vst [vmem:[#allocation33_spill] sm:$0xff] %v2173_v53  ;;  %v2189_v25 = vshrl.u32 %v2962_v37, 16  ;;  %v2964_v17 = vmul.u32 2221713035, %v1957_v36  ;;  %v2965_v26 = vmul.u32 2221713035, %v1961_v22 }
  0xb0   : > { %2961 = vst [vmem:[#allocation34_spill] sm:$0xff] %v2183_v62  ;;  %v2193_v53 = vshrl.u32 %v2963_v24, 16  ;;  %v2966_v42 = vmul.u32 2221713035, %v1965_v7  ;;  %v2967_v10 = vmul.u32 2221713035, %v1969_v41 }
  0xb1   : > { %v2197_v35 = vshrl.u32 %v2964_v17, 16  ;;  %v2201_v21 = vshrl.u32 %v2965_v26, 16  ;;  %v2969_v36 = vmul.u32 2221713035, %v1973_v0  ;;  %v2970_v22 = vmul.u32 2221713035, %v1977_v28 }
  0xb2   : > { %v2205_v62 = vshrl.u32 %v2966_v42, 16  ;;  %v2209_v37 = vshrl.u32 %v2967_v10, 16  ;;  %v2972_v41 = vmul.u32 2221713035, %v1981_v34  ;;  %v2973_v32 = vmul.u32 2221713035, %v1985_v45 }
  0xb3   : > { %v2215_v17 = vshrl.u32 %v2969_v36, 16  ;;  %v2219_v26 = vshrl.u32 %v2970_v22, 16  ;;  %v2974_v28 = vmul.u32 2221713035, %v1989_v46  ;;  %v2975_v7 = vmul.u32 2221713035, %v1993_v49 }
  0xb4   : > { %2968 = vst [vmem:[#allocation35_spill] sm:$0xff] %v2209_v37  ;;  %v2225_v10 = vshrl.u32 %v2972_v41, 16  ;;  %v2229_v37 = vshrl.u32 %v2973_v32, 16  ;;  %v2977_v42 = vmul.u32 2221713035, %v1810_v8 }
  0xb5   : > { %2971 = vst [vmem:[#allocation36_spill] sm:$0xff] %v2219_v26  ;;  %v2235_v22 = vshrl.u32 %v2974_v28, 16  ;;  %v2239_v26 = vshrl.u32 %v2975_v7, 16  ;;  %v2978_v45 = vmul.u32 2221713035, %v1815_v47 }
  0xb6   : > { %v652_v41 = vxor.u32 %v2049_v9, %v2977_v42  ;;  %v2979_v24 = vmul.u32 2221713035, %v1824_v31  ;;  %v2980_v46 = vmul.u32 2221713035, %v1829_v39 }
  0xb7   : > { %2976 = vst [vmem:[#allocation37_spill] sm:$0xff] %v2239_v26  ;;  %v653_v32 = vxor.u32 %v2053_v11, %v2978_v45  ;;  %v2981_v8 = vmul.u32 2221713035, %v1997_v50  ;;  %v2982_v47 = vmul.u32 2221713035, %v2001_v61 }
  0xb8   : > { %v654_v36 = vxor.u32 %v2059_v19, %v2979_v24  ;;  %v655_v28 = vxor.u32 %v2063_v54, %v2980_v46  ;;  %v2984_v31 = vmul.u32 2221713035, %v2007_v40  ;;  %v2986_v39 = vmul.u32 2221713035, %v2011_v48 }
  0xb9   : > { %v2257_v26 = vshrl.u32 %v2981_v8, 16  ;;  %v2261_v9 = vshrl.u32 %v2982_v47, 16  ;;  %v2988_v46 = vmul.u32 2221713035, %v1834_v2  ;;  %v2989_v54 = vmul.u32 2221713035, %v1839_v15 }
  0xba   : > { %v2265_v45 = vshrl.u32 %v2984_v31, 16  ;;  %v2269_v11 = vshrl.u32 %v2986_v39, 16  ;;  %v2990_v8 = vld [vmem:[#allocation22_spill] sm:$0xff]  ;;  %v2991_v7 = vmul.u32 2221713035, %v1844_v4  ;;  %v2992_v31 = vld [vmem:[#allocation23_spill] sm:$0xff] }
  0xbb   : > { %2983 = vst [vmem:[#allocation38_spill] sm:$0xff] %v2261_v9  ;;  %v656_v19 = vxor.u32 %v2069_v23, %v2988_v46  ;;  %v657_v24 = vxor.u32 %v2073_v57, %v2989_v54  ;;  %v2995_v39 = vld [vmem:[#allocation24_spill] sm:$0xff]  ;;  %v702_v40 = vshrl.u32 %v652_v41, 8  ;;  %v703_v2 = vshrl.u32 %v653_v32, 8 }
  0xbc   : > { %2985 = vst [vmem:[#allocation42_spill] sm:$0xff] %v2265_v45  ;;  %2987 = vst [vmem:[#allocation43_spill] sm:$0xff] %v2269_v11  ;;  %v658_v49 = vxor.u32 %v2992_v31, %v2991_v7  ;;  %v2993_v45 = vld [vmem:[#allocation39_spill] sm:$0xff]  ;;  %v704_v9 = vshrl.u32 %v654_v36, 8  ;;  %v705_v23 = vshrl.u32 %v655_v28, 8  ;;  %v3006_v32 = vld [vmem:[#allocation40_spill] sm:$0xff] }
  0xbd   : > { %v2994_v48 = vmul.u32 2221713035, %v2993_v45  ;;  %v2996_v15 = vmul.u32 2221713035, %v2017_v38  ;;  %v3008_v31 = vld [vmem:[#allocation25_spill] sm:$0xff]  ;;  %v707_v42 = vshrl.u32 %v657_v24, 8 }
  0xbe   : > { %v2998_v57 = vmul.u32 2221713035, %v2021_v59  ;;  %v3000_v4 = vmul.u32 2221713035, %v2027_v51  ;;  %v752_v59 = vcvt.s32.f32 %v702_v40 }
  0xbf   : > { %v659_v11 = vxor.u32 %v2995_v39, %v2994_v48  ;;  %v2287_v46 = vshrl.u32 %v2996_v15, 16  ;;  %v3002_v7 = vmul.u32 2221713035, %v2031_v43  ;;  %v3004_v48 = vld [vmem:[#allocation6_spill] sm:$0xff]  ;;  %v3007_v28 = vmul.u32 2221713035, %v3006_v32 }
  0xc0   : > { %v2291_v54 = vshrl.u32 %v2998_v57, 16  ;;  %v2295_v47 = vshrl.u32 %v3000_v4, 16  ;;  %v3005_v41 = vmul.u32 2221713035, %v3004_v48  ;;  %v706_v15 = vshrl.u32 %v656_v19, 8  ;;  %v3010_v4 = vld [vmem:[#allocation7_spill] sm:$0xff] }
  0xc1   : > { %2997 = vst [vmem:[#allocation11_spill] sm:$0xff] %v2287_v46  ;;  %v2299_v45 = vshrl.u32 %v3002_v7, 16  ;;  %v661_v39 = vxor.u32 %v3008_v31, %v3007_v28  ;;  %v3009_v57 = vmul.u32 2221713035, %v1864_v16  ;;  %v708_v7 = vshrl.u32 %v658_v49, 8  ;;  %v3018_v28 = vld [vmem:[#allocation41_spill] sm:$0xff] }
  0xc2   : > { %2999 = vst [vmem:[#allocation23_spill] sm:$0xff] %v2291_v54  ;;  %3001 = vst [vmem:[#allocation39_spill] sm:$0xff] %v2295_v47  ;;  %v660_v36 = vxor.u32 %v2089_v5, %v3005_v41  ;;  %v3011_v47 = vmul.u32 2221713035, %v3010_v4  ;;  %v3012_v54 = vld [vmem:[#allocation26_spill] sm:$0xff]  ;;  %v753_v48 = vcvt.s32.f32 %v703_v2  ;;  %v754_v46 = vcvt.s32.f32 %v704_v9  ;;  %v3020_v49 = vld [vmem:[#allocation27_spill] sm:$0xff] }
  0xc3   : > { %3003 = vst [vmem:[#allocation24_spill] sm:$0xff] %v2299_v45  ;;  %v662_v51 = vxor.u32 %v2099_v52, %v3009_v57  ;;  %v709_v45 = vshrl.u32 %v659_v11, 8  ;;  %v755_v5 = vcvt.s32.f32 %v705_v23  ;;  %v3013_v41 = vmul.u32 2221713035, %v2037_v55  ;;  %v3022_v57 = vld [vmem:[#allocation8_spill] sm:$0xff] }
  0xc4   : > { %v663_v43 = vxor.u32 %v3012_v54, %v3011_v47  ;;  %v3015_v19 = vmul.u32 2221713035, %v2990_v8  ;;  %v3017_v16 = vmul.u32 2221713035, %v1874_v18  ;;  %v710_v40 = vshrl.u32 %v660_v36, 8 }
  0xc5   : > { %v2315_v32 = vshrl.u32 %v3013_v41, 16  ;;  %v3019_v47 = vmul.u32 2221713035, %v3018_v28  ;;  %v711_v2 = vshrl.u32 %v661_v39, 8  ;;  %v756_v9 = vcvt.s32.f32 %v706_v15  ;;  %v3024_v41 = vld [vmem:[#allocation28_spill] sm:$0xff]  ;;  %v3026_v39 = vld [vmem:[#allocation9_spill] sm:$0xff] }
  0xc6   : > { %v2319_v24 = vshrl.u32 %v3015_v19, 16  ;;  %v664_v52 = vxor.u32 %v2109_v29, %v3017_v16  ;;  %v757_v23 = vcvt.s32.f32 %v707_v42  ;;  %v3021_v54 = vmul.u32 2221713035, %v1884_v6  ;;  %v3028_v15 = vld [vmem:[#allocation29_spill] sm:$0xff] }
  0xc7   : > { %3014 = vst [vmem:[#allocation6_spill] sm:$0xff] %v2315_v32  ;;  %v665_v11 = vxor.u32 %v3020_v49, %v3019_v47  ;;  %v3023_v4 = vmul.u32 2221713035, %v3022_v57  ;;  %v713_v18 = vshrl.u32 %v663_v43, 8  ;;  %v758_v8 = vcvt.s32.f32 %v708_v7 }
  0xc8   : > { %3016 = vst [vmem:[#allocation40_spill] sm:$0xff] %v2319_v24  ;;  %v666_v31 = vxor.u32 %v2119_v13, %v3021_v54  ;;  %v712_v24 = vshrl.u32 %v662_v51, 8  ;;  %v759_v29 = vcvt.s32.f32 %v709_v45  ;;  %v802_v16 = vadd.f32 %v754_v46, %v752_v59  ;;  %v3030_v59 = vld [vmem:[#allocation10_spill] sm:$0xff] }
  0xc9   : > { %v667_v19 = vxor.u32 %v3024_v41, %v3023_v4  ;;  %v803_v28 = vadd.f32 %v755_v5, %v753_v48  ;;  %v3025_v47 = vmul.u32 2221713035, %v2925_v12  ;;  %v3027_v42 = vmul.u32 2221713035, %v3026_v39  ;;  %v3032_v45 = vld [vmem:[#allocation30_spill] sm:$0xff] }
  0xca   : > { %v714_v49 = vshrl.u32 %v664_v52, 8  ;;  %v715_v13 = vshrl.u32 %v665_v11, 8  ;;  %v760_v54 = vcvt.s32.f32 %v710_v40  ;;  %v761_v57 = vcvt.s32.f32 %v711_v2  ;;  %v3034_v40 = vld [vmem:[#allocation44_spill] sm:$0xff] }
  0xcb   : > { %v668_v36 = vxor.u32 %v2129_v60, %v3025_v47  ;;  %v669_v6 = vxor.u32 %v3028_v15, %v3027_v42  ;;  %v804_v32 = vadd.f32 %v802_v16, %v756_v9  ;;  %v805_v4 = vadd.f32 %v803_v28, %v757_v23  ;;  %v3036_v9 = vld [vmem:[#allocation31_spill] sm:$0xff] }
  0xcc   : > { %v3029_v51 = vmul.u32 2221713035, %v2929_v27  ;;  %v3031_v46 = vmul.u32 2221713035, %v3030_v59  ;;  %v716_v7 = vshrl.u32 %v666_v31, 8  ;;  %v717_v60 = vshrl.u32 %v667_v19, 8 }
  0xcd   : > { %v762_v48 = vcvt.s32.f32 %v712_v24  ;;  %v763_v5 = vcvt.s32.f32 %v713_v18  ;;  %v806_v41 = vadd.f32 %v804_v32, %v758_v8  ;;  %v807_v47 = vadd.f32 %v805_v4, %v759_v29  ;;  %v3038_v8 = vld [vmem:[#allocation45_spill] sm:$0xff]  ;;  %v3040_v19 = vld [vmem:[#allocation32_spill] sm:$0xff] }
  0xce   : > { %v670_v43 = vxor.u32 %v2139_v63, %v3029_v51  ;;  %v671_v12 = vxor.u32 %v3032_v45, %v3031_v46  ;;  %v3033_v52 = vmul.u32 2221713035, %v1914_v1  ;;  %v3035_v2 = vmul.u32 2221713035, %v3034_v40 }
  0xcf   : > { %v718_v23 = vshrl.u32 %v668_v36, 8  ;;  %v719_v63 = vshrl.u32 %v669_v6, 8  ;;  %v764_v16 = vcvt.s32.f32 %v714_v49  ;;  %v765_v28 = vcvt.s32.f32 %v715_v13  ;;  %v3042_v49 = vld [vmem:[#allocation12_spill] sm:$0xff] }
  0xd0   : > { %v672_v11 = vxor.u32 %v2149_v44, %v3033_v52  ;;  %v673_v27 = vxor.u32 %v3036_v9, %v3035_v2  ;;  %v808_v39 = vadd.f32 %v806_v41, %v760_v54  ;;  %v809_v42 = vadd.f32 %v807_v47, %v761_v57  ;;  %v3044_v54 = vld [vmem:[#allocation33_spill] sm:$0xff] }
  0xd1   : > { %v3037_v31 = vmul.u32 2221713035, %v2937_v56  ;;  %v3039_v32 = vmul.u32 2221713035, %v3038_v8  ;;  %v720_v18 = vshrl.u32 %v670_v43, 8  ;;  %v721_v44 = vshrl.u32 %v671_v12, 8 }
  0xd2   : > { %v766_v29 = vcvt.s32.f32 %v716_v7  ;;  %v767_v15 = vcvt.s32.f32 %v717_v60  ;;  %v810_v4 = vadd.f32 %v808_v39, %v762_v48  ;;  %v811_v51 = vadd.f32 %v809_v42, %v763_v5  ;;  %v3046_v7 = vld [vmem:[#allocation46_spill] sm:$0xff] }
  0xd3   : > { %v674_v24 = vxor.u32 %v2159_v58, %v3037_v31  ;;  %v675_v1 = vxor.u32 %v3040_v19, %v3039_v32  ;;  %v3041_v36 = vmul.u32 2221713035, %v1933_v30  ;;  %v3043_v13 = vmul.u32 2221713035, %v3042_v49  ;;  %v3048_v48 = vld [vmem:[#allocation34_spill] sm:$0xff]  ;;  %v3052_v31 = vld [vmem:[#allocation47_spill] sm:$0xff] }
  0xd4   : > { %v722_v57 = vshrl.u32 %v672_v11, 8  ;;  %v723_v58 = vshrl.u32 %v673_v27, 8  ;;  %v768_v59 = vcvt.s32.f32 %v718_v23  ;;  %v769_v46 = vcvt.s32.f32 %v719_v63  ;;  %v3050_v27 = vld [vmem:[#allocation13_spill] sm:$0xff]  ;;  %v3054_v32 = vld [vmem:[#allocation48_spill] sm:$0xff]  ;;  %v3060_v49 = vld [vmem:[#allocation35_spill] sm:$0xff] }
  0xd5   : > { %v676_v6 = vxor.u32 %v2169_v20, %v3041_v36  ;;  %v677_v56 = vxor.u32 %v3044_v54, %v3043_v13  ;;  %v812_v45 = vadd.f32 %v810_v4, %v764_v16  ;;  %v813_v41 = vadd.f32 %v811_v51, %v765_v28  ;;  %v3058_v36 = vld [vmem:[#allocation49_spill] sm:$0xff] }
  0xd6   : > { %v3045_v43 = vmul.u32 2221713035, %v1941_v33  ;;  %v3047_v60 = vmul.u32 2221713035, %v3046_v7  ;;  %v724_v5 = vshrl.u32 %v674_v24, 8  ;;  %v725_v20 = vshrl.u32 %v675_v1, 8 }
  0xd7   : > { %v770_v47 = vcvt.s32.f32 %v720_v18  ;;  %v771_v52 = vcvt.s32.f32 %v721_v44  ;;  %v814_v40 = vadd.f32 %v812_v45, %v766_v29  ;;  %v815_v2 = vadd.f32 %v813_v41, %v767_v15  ;;  %v3056_v15 = vld [vmem:[#allocation14_spill] sm:$0xff]  ;;  %v3062_v45 = vld [vmem:[#allocation15_spill] sm:$0xff] }
  0xd8   : > { %v678_v12 = vxor.u32 %v2179_v14, %v3045_v43  ;;  %v679_v30 = vxor.u32 %v3048_v48, %v3047_v60  ;;  %v3049_v11 = vmul.u32 2221713035, %v1949_v3  ;;  %v3051_v23 = vmul.u32 2221713035, %v3050_v27  ;;  %v3064_v43 = vld [vmem:[#allocation36_spill] sm:$0xff] }
  0xd9   : > { %v726_v63 = vshrl.u32 %v676_v6, 8  ;;  %v727_v14 = vshrl.u32 %v677_v56, 8  ;;  %v772_v16 = vcvt.s32.f32 %v722_v57  ;;  %v773_v28 = vcvt.s32.f32 %v723_v58 }
  0xda   : > { %v680_v9 = vxor.u32 %v2189_v25, %v3049_v11  ;;  %v681_v33 = vxor.u32 %v2193_v53, %v3051_v23  ;;  %v816_v39 = vadd.f32 %v814_v40, %v768_v59  ;;  %v817_v42 = vadd.f32 %v815_v2, %v769_v46 }
  0xdb   : > { %v3053_v24 = vmul.u32 2221713035, %v3052_v31  ;;  %v3055_v19 = vmul.u32 2221713035, %v3054_v32  ;;  %v728_v1 = vshrl.u32 %v678_v12, 8  ;;  %v729_v25 = vshrl.u32 %v679_v30, 8 }
  0xdc   : > { %v774_v18 = vcvt.s32.f32 %v724_v5  ;;  %v775_v44 = vcvt.s32.f32 %v725_v20  ;;  %v818_v29 = vadd.f32 %v816_v39, %v770_v47  ;;  %v819_v53 = vadd.f32 %v817_v42, %v771_v52  ;;  %v3066_v52 = vld [vmem:[#allocation50_spill] sm:$0xff]  ;;  %v3072_v39 = vld [vmem:[#allocation37_spill] sm:$0xff] }
  0xdd   : > { %v682_v8 = vxor.u32 %v2197_v35, %v3053_v24  ;;  %v683_v3 = vxor.u32 %v2201_v21, %v3055_v19  ;;  %v3057_v4 = vmul.u32 2221713035, %v3056_v15  ;;  %v3059_v6 = vmul.u32 2221713035, %v3058_v36  ;;  %v3078_v36 = vld [vmem:[#allocation42_spill] sm:$0xff] }
  0xde   : > { %v730_v54 = vshrl.u32 %v680_v9, 8  ;;  %v731_v35 = vshrl.u32 %v681_v33, 8  ;;  %v776_v56 = vcvt.s32.f32 %v726_v63  ;;  %v777_v57 = vcvt.s32.f32 %v727_v14  ;;  %v3068_v33 = vld [vmem:[#allocation16_spill] sm:$0xff] }
  0xdf   : > { %v684_v51 = vxor.u32 %v2205_v62, %v3057_v4  ;;  %v685_v13 = vxor.u32 %v3060_v49, %v3059_v6  ;;  %v820_v58 = vadd.f32 %v818_v29, %v772_v16  ;;  %v821_v21 = vadd.f32 %v819_v53, %v773_v28  ;;  %v3070_v16 = vld [vmem:[#allocation51_spill] sm:$0xff]  ;;  %v3076_v4 = vld [vmem:[#allocation17_spill] sm:$0xff]  ;;  %v3079_v49 = vld [vmem:[#allocation18_spill] sm:$0xff] }
  0xe0   : > { %v3061_v59 = vmul.u32 2221713035, %v1973_v0  ;;  %v3063_v41 = vmul.u32 2221713035, %v3062_v45  ;;  %v732_v7 = vshrl.u32 %v682_v8, 8  ;;  %v733_v62 = vshrl.u32 %v683_v3, 8 }
  0xe1   : > { %v778_v60 = vcvt.s32.f32 %v728_v1  ;;  %v779_v48 = vcvt.s32.f32 %v729_v25  ;;  %v822_v30 = vadd.f32 %v820_v58, %v774_v18  ;;  %v823_v5 = vadd.f32 %v821_v21, %v775_v44  ;;  %v3075_v1 = vld [vmem:[#allocation38_spill] sm:$0xff]  ;;  %v3084_v45 = vld [vmem:[#allocation19_spill] sm:$0xff] }
  0xe2   : > { %v686_v46 = vxor.u32 %v2215_v17, %v3061_v59  ;;  %v687_v12 = vxor.u32 %v3064_v43, %v3063_v41  ;;  %v3065_v20 = vmul.u32 2221713035, %v1981_v34  ;;  %v3067_v40 = vmul.u32 2221713035, %v3066_v52  ;;  %v3083_v59 = vld [vmem:[#allocation11_spill] sm:$0xff] }
  0xe3   : > { %v734_v2 = vshrl.u32 %v684_v51, 8  ;;  %v735_v17 = vshrl.u32 %v685_v13, 8  ;;  %v780_v11 = vcvt.s32.f32 %v730_v54  ;;  %v781_v9 = vcvt.s32.f32 %v731_v35  ;;  %v3081_v54 = vld [vmem:[#allocation43_spill] sm:$0xff] }
  0xe4   : > { %v688_v47 = vxor.u32 %v2225_v10, %v3065_v20  ;;  %v689_v0 = vxor.u32 %v2229_v37, %v3067_v40  ;;  %v824_v27 = vadd.f32 %v822_v30, %v776_v56  ;;  %v825_v23 = vadd.f32 %v823_v5, %v777_v57  ;;  %v3086_v43 = vld [vmem:[#allocation23_spill] sm:$0xff]  ;;  %v3087_v20 = vld [vmem:[#allocation20_spill] sm:$0xff] }
  0xe5   : > { %v3069_v63 = vmul.u32 2221713035, %v3068_v33  ;;  %v3071_v28 = vmul.u32 2221713035, %v3070_v16  ;;  %v736_v42 = vshrl.u32 %v686_v46, 8  ;;  %v737_v10 = vshrl.u32 %v687_v12, 8 }
  0xe6   : > { %v782_v31 = vcvt.s32.f32 %v732_v7  ;;  %v783_v24 = vcvt.s32.f32 %v733_v62  ;;  %v826_v8 = vadd.f32 %v824_v27, %v778_v60  ;;  %v827_v37 = vadd.f32 %v825_v23, %v779_v48  ;;  %v3089_v52 = vld [vmem:[#allocation39_spill] sm:$0xff]  ;;  %v3094_v16 = vld [vmem:[#allocation6_spill] sm:$0xff] }
  0xe7   : > { %v690_v14 = vxor.u32 %v2235_v22, %v3069_v63  ;;  %v691_v34 = vxor.u32 %v3072_v39, %v3071_v28  ;;  %v3073_v32 = vmul.u32 2221713035, %v1997_v50  ;;  %v3074_v3 = vmul.u32 2221713035, %v2001_v61  ;;  %v3095_v39 = vld [vmem:[#allocation22_spill] sm:$0xff] }
  0xe8   : > { %v738_v18 = vshrl.u32 %v688_v47, 8  ;;  %v739_v22 = vshrl.u32 %v689_v0, 8  ;;  %v784_v44 = vcvt.s32.f32 %v734_v2  ;;  %v785_v29 = vcvt.s32.f32 %v735_v17  ;;  %v3090_v0 = vld [vmem:[#allocation21_spill] sm:$0xff]  ;;  %v3092_v17 = vld [vmem:[#allocation24_spill] sm:$0xff] }
  0xe9   : > { %v692_v19 = vxor.u32 %v2257_v26, %v3073_v32  ;;  %v693_v25 = vxor.u32 %v3075_v1, %v3074_v3  ;;  %v828_v53 = vadd.f32 %v826_v8, %v780_v11  ;;  %v829_v15 = vadd.f32 %v827_v37, %v781_v9 }
  0xea   : > { %v3077_v51 = vmul.u32 2221713035, %v3076_v4  ;;  %v3080_v13 = vmul.u32 2221713035, %v3079_v49  ;;  %v740_v35 = vshrl.u32 %v690_v14, 8  ;;  %v741_v26 = vshrl.u32 %v691_v34, 8 }
  0xeb   : > { %v786_v56 = vcvt.s32.f32 %v736_v42  ;;  %v787_v61 = vcvt.s32.f32 %v737_v10  ;;  %v830_v57 = vadd.f32 %v828_v53, %v782_v31  ;;  %v831_v58 = vadd.f32 %v829_v15, %v783_v24  ;;  %v3097_v42 = vld [vmem:[#allocation40_spill] sm:$0xff] }
  0xec   : > { %v694_v6 = vxor.u32 %v3078_v36, %v3077_v51  ;;  %v695_v50 = vxor.u32 %v3081_v54, %v3080_v13  ;;  %v3082_v21 = vmul.u32 2221713035, %v2017_v38  ;;  %v3085_v41 = vmul.u32 2221713035, %v3084_v45 }
  0xed   : > { %v742_v7 = vshrl.u32 %v692_v19, 8  ;;  %v743_v62 = vshrl.u32 %v693_v25, 8  ;;  %v788_v60 = vcvt.s32.f32 %v738_v18  ;;  %v789_v48 = vcvt.s32.f32 %v739_v22 }
  0xee   : > { %v696_v46 = vxor.u32 %v3083_v59, %v3082_v21  ;;  %v697_v12 = vxor.u32 %v3086_v43, %v3085_v41  ;;  %v832_v30 = vadd.f32 %v830_v57, %v784_v44  ;;  %v833_v5 = vadd.f32 %v831_v58, %v785_v29 }
  0xef   : > { %v3088_v47 = vmul.u32 2221713035, %v3087_v20  ;;  %v3091_v2 = vmul.u32 2221713035, %v3090_v0  ;;  %v744_v11 = vshrl.u32 %v694_v6, 8  ;;  %v745_v9 = vshrl.u32 %v695_v50, 8 }
  0xf0   : > { %v790_v27 = vcvt.s32.f32 %v740_v35  ;;  %v791_v23 = vcvt.s32.f32 %v741_v26  ;;  %v834_v33 = vadd.f32 %v832_v30, %v786_v56  ;;  %v835_v63 = vadd.f32 %v833_v5, %v787_v61 }
  0xf1   : > { %v698_v40 = vxor.u32 %v3089_v52, %v3088_v47  ;;  %v699_v38 = vxor.u32 %v3092_v17, %v3091_v2  ;;  %v3093_v14 = vmul.u32 2221713035, %v2037_v55  ;;  %v3096_v34 = vmul.u32 2221713035, %v3095_v39 }
  0xf2   : > { %v746_v31 = vshrl.u32 %v696_v46, 8  ;;  %v747_v24 = vshrl.u32 %v697_v12, 8  ;;  %v792_v8 = vcvt.s32.f32 %v742_v7  ;;  %v793_v37 = vcvt.s32.f32 %v743_v62 }
  0xf3   : > { %v700_v28 = vxor.u32 %v3094_v16, %v3093_v14  ;;  %v701_v10 = vxor.u32 %v3097_v42, %v3096_v34  ;;  %v836_v32 = vadd.f32 %v834_v33, %v788_v60  ;;  %v837_v19 = vadd.f32 %v835_v63, %v789_v48 }
  0xf4   : > { %v748_v3 = vshrl.u32 %v698_v40, 8  ;;  %v749_v1 = vshrl.u32 %v699_v38, 8  ;;  %v794_v25 = vcvt.s32.f32 %v744_v11  ;;  %v795_v18 = vcvt.s32.f32 %v745_v9 }
  0xf5   : > { %v838_v22 = vadd.f32 %v836_v32, %v790_v27  ;;  %v839_v55 = vadd.f32 %v837_v19, %v791_v23  ;;  %v750_v44 = vshrl.u32 %v700_v28, 8  ;;  %v751_v29 = vshrl.u32 %v701_v10, 8 }
  0xf6   : > { %v796_v53 = vcvt.s32.f32 %v746_v31  ;;  %v797_v15 = vcvt.s32.f32 %v747_v24  ;;  %v798_v36 = vcvt.s32.f32 %v748_v3  ;;  %v799_v6 = vcvt.s32.f32 %v749_v1 }
  0xf7   : > { %v840_v4 = vadd.f32 %v838_v22, %v792_v8  ;;  %v841_v51 = vadd.f32 %v839_v55, %v793_v37  ;;  %v800_v54 = vcvt.s32.f32 %v750_v44  ;;  %v801_v50 = vcvt.s32.f32 %v751_v29 }
  0xf9   : > { %v842_v49 = vadd.f32 %v840_v4, %v794_v25  ;;  %v843_v13 = vadd.f32 %v841_v51, %v795_v18 }
  0xfb   : > { %v844_v35 = vadd.f32 %v842_v49, %v796_v53  ;;  %v845_v26 = vadd.f32 %v843_v13, %v797_v15 }
  0xfd   : > { %v846_v56 = vadd.f32 %v844_v35, %v798_v36  ;;  %v847_v61 = vadd.f32 %v845_v26, %v799_v6 }
  0xff   : > { %v848_v57 = vadd.f32 %v846_v56, %v800_v54  ;;  %v849_v58 = vadd.f32 %v847_v61, %v801_v50 }
 0x101   : > { %854 = vst [vmem:[%s107_s25] sm:$0xff] %v848_v57  ;;  %855 = vst [vmem:[%s107_s25 + $0x8] sm:$0xff] %v849_v58 }
 0x102   : > { %1007 = shalt.err (!%p1004_p3)
}
 0x103   : > { %s1008_s6 = scalar_lea.hbm %s2443_s29, 256  ;;  %s1012_s0 = scalar_lea.hbm %s2486_s1, 512 }
 0x104   : > { %p1009_p5 = scmp.ne.s32.totalorder %s2443_s29, %s1008_s6  ;;  %p1013_p9 = scmp.lt.s32.totalorder %s2443_s29, %s2486_s1 }
 0x105   : > { %p1014_p10 = scmp.lt.s32.totalorder %s1012_s0, %s1008_s6 }
 0x106   : > { %p1010_p6 = pnand %p1009_p5, %p1126_p4 }
 0x107   : > { %p1015_p11 = por %p1014_p10, %p1013_p9 }
 0x108   : > { %p1011_p7 = pneg %p1010_p6 }
 0x10a   : > { %p1016_p12 = pnand %p1015_p11, %p1011_p7 }
 0x10c   : > { %1019 = shalt.err (!%p1016_p12)
}
 0x10d   : > { %938 = dma.vmem_to_hbm [thread:$0]  (%p1126_p4), %s872_s26, 256, %s2443_s29, %s857_s30  }
 0x10e PF: > { %p944_p13 = scmp.ge.s32.totalorder %s1070_s13, 2  ;;  %s883_s18 = sand.u32 1, %s1050_s8  }
 0x10f   : > { %s884_s21 = scalar_lea.sflag [#allocation4], %s883_s18 }
 0x110   : > { %p941_p0 = pnand %p944_p13, %p1133_p8 }
 0x112   : > { %p942_p1 = pneg %p941_p0 }
 0x114   : > { %1045 = dma.done.wait (%p942_p1), %s884_s21, 256  }
 0x115   : > { %1047 = vsyncadd (%p942_p1), %s884_s21, 4294967040  ;;  %s15_s13 = sadd.s32 1, %s1070_s13   ;;  %s3098_s8 = smov %s1054_s9 }
 0x116   : > { %p12_p2 = scmp.ge.s32.totalorder %s15_s13, 4   ;;  %s3099_s9 = smov %s1058_s10 }
 0x117   : > { %s3100_s10 = smov %s1139_s20  ;;  %s3101_s11 = smov %s1066_s12 }
 0x118   : > { %s3102_s12 = smov %s3104_s15  ;;  %14 = sbr.rel (!%p12_p2) target bundleno = 6 (0x6), region = 60 }
 0x11d   :  { %889 = vsyncpa [#allocation4], 1 }
 0x11e   :  { %891 = vsyncpa [#allocation4 + $0x1], 1 }

</bundles_post_ra>
